<compile_context>
chip_gen: v7x
topology: tpu7x:2x2x1
jax: 0.10.0
libtpu: 0.0.40
codegen_flags: <defaults>
</compile_context>

<pallas_src>
import functools

import numpy as np
import jax
import jax.numpy as jnp
from jax.experimental import pallas as pl
from jax.experimental.pallas import tpu as pltpu

# ---- module configuration (matches LRSCWideActResBlock(nf=16, idx=1)) ------
NF = 16                    # nf
IDX = 1                    # idx > 0 -> head 1x1 conv is present
EXPAND = 6                 # expand
NMID = NF * EXPAND         # 96
NLIN = int(NF * 0.8)       # int(nf * linear) = 12
CIN = NF * (IDX + 1)       # input channels to the block = 32
H = W = 16
N = 2
HW = H * W                 # 256
LANES = N * HW             # 512 : both images stacked on the lane axis


def _lrsc_kernel(x_ref, wa_ref, ba_ref, wbig_ref, bmap_ref, mask_ref,
                 out_ref, x_s, y_s, z_s, *, n, w_dim, hw, lanes, nf):
    """Single grid step.  Channels on sublanes, (image, H*W) flattened on lanes.

      x_ref    (N, CIN, HW)      wa_ref  (96, CIN)    ba_ref  (96, 1)
      wbig_ref (144, 96)         bmap_ref(NF, L)      mask_ref(9, L)
      out_ref  (N, NF + CIN, HW)
      x_s (CIN, L)  y_s (96, L)  z_s (144, L)          with L = N * HW
    """
    # 1) stack both images side by side on the lane axis (L = 512 lanes)
    for b in range(n):
        x_s[:, b * hw:(b + 1) * hw] = x_ref[b]

    # 2) fused head 1x1 + body conv1 (32 -> 96) as ONE dot on all 512 lanes,
    #    bias + ReLU fused on the VPU; staged to VMEM to bound live ranges.
    y_s[...] = jnp.maximum(
        jnp.dot(wa_ref[...], x_s[...], preferred_element_type=jnp.float32)
        + ba_ref[...], 0.0)

    # 3) all nine 3x3 taps (with conv2 folded in) as ONE dot: Z = Wbig @ y.
    z_s[...] = jnp.dot(wbig_ref[...], y_s[...],
                       preferred_element_type=jnp.float32)

    # 4) commuted roll+mask applied to the small (16, L) tap results.
    acc = bmap_ref[...]                      # (NF, L): b3 + padding-aware b2@w3
    for t in range(9):
        dh, dw = t // 3, t % 3
        s = (dh - 1) * w_dim + (dw - 1)      # flattened per-image pixel shift
        zt = z_s[t * nf:(t + 1) * nf, :]     # (NF, L) slice of Z
        if s == 0:                           # center tap: no roll, no mask
            acc = acc + zt
        else:
            rolled = pltpu.roll(zt, shift=(-s) % lanes, axis=1)     # XLU
            acc = acc + rolled * mask_ref[t:t + 1, :]
    # cross-image wraps of the circular roll are all zeroed by the per-image
    # boundary masks, so lane-stacking the batch is exact.

    # 5) torch.cat([res, x], dim=1): un-stack lanes + direct sublane stores.
    for b in range(n):
        out_ref[b, :nf, :] = acc[:, b * hw:(b + 1) * hw]
        out_ref[b, nf:, :] = x_ref[b]


def lrsc_forward(x_nchw, kparams):
    """x_nchw: (N, CIN, H, W) float32.  Returns (N, NF+CIN, H, W)."""
    wa, ba, wbig, bmap_l, masks_l = kparams
    n, cin, h, w = x_nchw.shape
    hw = h * w
    lanes = n * hw
    x2 = x_nchw.reshape(n, cin, hw)             # free reshape, no transpose

    kernel = functools.partial(_lrsc_kernel, n=n, w_dim=w, hw=hw,
                               lanes=lanes, nf=NF)
    out2 = pl.pallas_call(
        kernel,
        out_shape=jax.ShapeDtypeStruct((n, NF + cin, hw), jnp.float32),
        grid=(1,),
        in_specs=[
            pl.BlockSpec((n, cin, hw), lambda i: (0, 0, 0)),
            pl.BlockSpec(wa.shape, lambda i: (0, 0)),
            pl.BlockSpec(ba.shape, lambda i: (0, 0)),
            pl.BlockSpec(wbig.shape, lambda i: (0, 0)),
            pl.BlockSpec(bmap_l.shape, lambda i: (0, 0)),
            pl.BlockSpec(masks_l.shape, lambda i: (0, 0)),
        ],
        out_specs=pl.BlockSpec((n, NF + cin, hw), lambda i: (0, 0, 0)),
        scratch_shapes=[
            pltpu.VMEM((cin, lanes), jnp.float32),      # x stacked on lanes
            pltpu.VMEM((NMID, lanes), jnp.float32),     # y  (96, 512)
            pltpu.VMEM((9 * NF, lanes), jnp.float32),   # Z  (144, 512)
        ],
        compiler_params=pltpu.CompilerParams(
            dimension_semantics=("arbitrary",)),
    )(x2, wa, ba, wbig, bmap_l, masks_l)

    return out2.reshape(n, NF + cin, h, w)      # free reshape, no transpose


# ---------------- effective (fused) kernel parameters (host, float64) -------
def build_kernel_params(head, body1, body2, body3, h, w, n):
    (wh, bh), (w1, b1), (w2, b2), (w3, b3) = [
        (np.asarray(p, np.float64), np.asarray(q, np.float64))
        for (p, q) in (head, body1, body2, body3)]
    wh_m = wh[:, :, 0, 0]                      # (NF,  CIN)
    w1_m = w1[:, :, 0, 0]                      # (96,  NF)
    w2_m = w2[:, :, 0, 0]                      # (12,  96)

    # Fuse head 1x1 and body conv1 (both linear, no nonlinearity between).
    wa = w1_m @ wh_m                           # (96, CIN)
    ba = (w1_m @ bh + b1)[:, None]             # (96, 1)

    # Fold body conv2 into each 3x3 tap: Wtap[dh,dw] = w3[:,:,dh,dw] @ w2,
    # then stack the nine taps into one (144, 96) matmul weight.
    wtap = np.einsum('oikl,ic->kloc', w3, w2_m).reshape(9, NF, NMID)
    wbig = wtap.reshape(9 * NF, NMID)          # (144, 96)

    # Per-tap boundary masks (zero padding of the 3x3 conv) and the per-pixel
    # bias map routing b2 through w3 only where the tap reads inside the image.
    hw = h * w
    p = np.arange(hw)
    hh, ww = p // w, p % w
    mask_rows = []
    for dh in range(3):
        for dw in range(3):
            kh, kw = dh - 1, dw - 1
            valid = ((hh + kh >= 0) & (hh + kh < h) &
                     (ww + kw >= 0) & (ww + kw < w))
            mask_rows.append(valid.astype(np.float64))
    masks = np.stack(mask_rows)                                   # (9, HW)
    bt = np.einsum('oikl,i->klo', w3, b2).reshape(9, NF)          # (9, NF)
    bias_map = b3[:, None] + np.einsum('to,tp->op', bt, masks)    # (NF, HW)

    # Tile masks / bias map per image for the lane-stacked (L = n*HW) layout.
    masks_l = np.tile(masks, (1, n))                              # (9, L)
    bmap_l = np.tile(bias_map, (1, n))                            # (NF, L)

    f32 = lambda a: jnp.asarray(a, jnp.float32)
    return f32(wa), f32(ba), f32(wbig), f32(bmap_l), f32(masks_l)


# ---------------- deterministic parameter construction ----------------------
def weight_norm_conv_params(key, cout, cin, ksize):
    """Deterministic conv params with torch weight_norm reparameterization."""
    kv, kg, kb = jax.random.split(key, 3)
    v = 0.1 * jax.random.normal(kv, (cout, cin, ksize, ksize), jnp.float32)
    g = jax.random.uniform(kg, (cout,), jnp.float32, minval=0.5, maxval=1.5)
    b = 0.05 * jax.random.normal(kb, (cout,), jnp.float32)
    norm = jnp.sqrt(jnp.sum(v * v, axis=(1, 2, 3), keepdims=True))
    w = (g[:, None, None, None] / norm) * v       # w = g * v / ||v||
    return w, b


# -------------------------- pure-JAX reference ------------------------------
def conv2d_nchw(x, w, b, pad):
    y = jax.lax.conv_general_dilated(
        x, w, window_strides=(1, 1), padding=[(pad, pad), (pad, pad)],
        dimension_numbers=("NCHW", "OIHW", "NCHW"),
        precision=jax.lax.Precision.HIGHEST)
    return y + b[None, :, None, None]


def reference_forward(x, torch_params):
    (wh, bh), (w1, b1), (w2, b2), (w3, b3) = torch_params
    r = conv2d_nchw(x, wh, bh, 0)                       # head 1x1
    r = jax.nn.relu(conv2d_nchw(r, w1, b1, 0))          # body conv1 + ReLU
    r = conv2d_nchw(r, w2, b2, 0)                       # body conv2
    r = conv2d_nchw(r, w3, b3, 1)                       # body conv3 (3x3, pad 1)
    return jnp.concatenate([r, x], axis=1)              # cat([res, x], dim=1)


if __name__ == "__main__":
    key = jax.random.PRNGKey(0)
    kx, kh_, k1_, k2_, k3_ = jax.random.split(key, 5)

    x = jax.random.normal(kx, (N, CIN, H, W), jnp.float32)

    wh, bh = weight_norm_conv_params(kh_, NF, CIN, 1)           # head 1x1
    w1, b1 = weight_norm_conv_params(k1_, NMID, NF, 1)          # body 1x1
    w2, b2 = weight_norm_conv_params(k2_, NLIN, NMID, 1)        # body 1x1
    w3, b3 = weight_norm_conv_params(k3_, NF, NLIN, 3)          # body 3x3

    kparams = build_kernel_params((wh, bh), (w1, b1), (w2, b2), (w3, b3),
                                  H, W, N)

    out = jax.jit(lambda xx: lrsc_forward(xx, kparams))(x)
    out = jax.block_until_ready(out)

    ref = reference_forward(x, ((wh, bh), (w1, b1), (w2, b2), (w3, b3)))
    # Tightened tolerance (was 1e-2): f32 operands + f32 accumulation; a
    # boundary-shift / sign error would show up as O(1) differences.
    np.testing.assert_allclose(np.asarray(out), np.asarray(ref),
                               rtol=1e-4, atol=1e-4)
    print("KERNEL_OK")
</pallas_src>

<mosaic_0001>
module attributes {stable_mosaic.version = 11 : i64} {
  func.func @_lrsc_kernel(%arg0: i32, %arg1: memref<2x32x256xf32, #tpu.memory_space<vmem>>, %arg2: memref<96x32xf32, #tpu.memory_space<vmem>>, %arg3: memref<96x1xf32, #tpu.memory_space<vmem>>, %arg4: memref<144x96xf32, #tpu.memory_space<vmem>>, %arg5: memref<16x512xf32, #tpu.memory_space<vmem>>, %arg6: memref<9x512xf32, #tpu.memory_space<vmem>>, %arg7: memref<2x48x256xf32, #tpu.memory_space<vmem>>, %arg8: memref<32x512xf32, #tpu.memory_space<vmem>>, %arg9: memref<96x512xf32, #tpu.memory_space<vmem>>, %arg10: memref<144x512xf32, #tpu.memory_space<vmem>>) attributes {dimension_semantics = [#tpu.dimension_semantics<arbitrary>], iteration_bounds = array<i64: 1>, scalar_prefetch = 0 : i64, scratch_operands = 3 : i64, tpu.core_type = #tpu.core_type<tc>, window_params = [{pipeline_mode = #tpu.pipeline_mode<synchronous>, transform_indices = @transform_0, window_bounds = array<i64: 2, 32, 256>}, {pipeline_mode = #tpu.pipeline_mode<synchronous>, transform_indices = @transform_1, window_bounds = array<i64: 96, 32>}, {pipeline_mode = #tpu.pipeline_mode<synchronous>, transform_indices = @transform_2, window_bounds = array<i64: 96, 1>}, {pipeline_mode = #tpu.pipeline_mode<synchronous>, transform_indices = @transform_3, window_bounds = array<i64: 144, 96>}, {pipeline_mode = #tpu.pipeline_mode<synchronous>, transform_indices = @transform_4, window_bounds = array<i64: 16, 512>}, {pipeline_mode = #tpu.pipeline_mode<synchronous>, transform_indices = @transform_5, window_bounds = array<i64: 9, 512>}, {pipeline_mode = #tpu.pipeline_mode<synchronous>, transform_indices = @transform_6, window_bounds = array<i64: 2, 48, 256>}]} {
    %c0 = arith.constant 0 : index
    %c0_0 = arith.constant 0 : index
    %c0_1 = arith.constant 0 : index
    %0 = vector.load %arg1[%c0, %c0_0, %c0_1] : memref<2x32x256xf32, #tpu.memory_space<vmem>>, vector<1x32x256xf32>
    %1 = vector.shape_cast %0 : vector<1x32x256xf32> to vector<32x256xf32>
    %c0_2 = arith.constant 0 : index
    %c0_3 = arith.constant 0 : index
    %2 = vector.load %arg8[%c0_2, %c0_3] : memref<32x512xf32, #tpu.memory_space<vmem>>, vector<32x256xf32>
    tpu.vector_store %arg8[%c0_2, %c0_3], %1 {strides = array<i32>} : memref<32x512xf32, #tpu.memory_space<vmem>>, vector<32x256xf32>,
    %c1 = arith.constant 1 : index
    %c0_4 = arith.constant 0 : index
    %c0_5 = arith.constant 0 : index
    %3 = vector.load %arg1[%c1, %c0_4, %c0_5] : memref<2x32x256xf32, #tpu.memory_space<vmem>>, vector<1x32x256xf32>
    %4 = vector.shape_cast %3 : vector<1x32x256xf32> to vector<32x256xf32>
    %c0_6 = arith.constant 0 : index
    %c256 = arith.constant 256 : index
    %5 = vector.load %arg8[%c0_6, %c256] : memref<32x512xf32, #tpu.memory_space<vmem>>, vector<32x256xf32>
    tpu.vector_store %arg8[%c0_6, %c256], %4 {strides = array<i32>} : memref<32x512xf32, #tpu.memory_space<vmem>>, vector<32x256xf32>,
    %c0_7 = arith.constant 0 : index
    %c0_8 = arith.constant 0 : index
    %6 = vector.load %arg2[%c0_7, %c0_8] : memref<96x32xf32, #tpu.memory_space<vmem>>, vector<96x32xf32>
    %c0_9 = arith.constant 0 : index
    %c0_10 = arith.constant 0 : index
    %7 = vector.load %arg8[%c0_9, %c0_10] : memref<32x512xf32, #tpu.memory_space<vmem>>, vector<32x512xf32>
    %cst = arith.constant dense<0.000000e+00> : vector<96x512xf32>
    %8 = tpu.matmul %6, %7, %cst {dimension_numbers = #tpu.dot_dimension_numbers<[1], [0], [0], [1], [0, 0, 1, 1], [], []>} : vector<96x32xf32>, vector<32x512xf32>, vector<96x512xf32> -> vector<96x512xf32>
    %c0_11 = arith.constant 0 : index
    %c0_12 = arith.constant 0 : index
    %9 = vector.load %arg3[%c0_11, %c0_12] : memref<96x1xf32, #tpu.memory_space<vmem>>, vector<96x1xf32>
    %10 = vector.broadcast %9 : vector<96x1xf32> to vector<96x512xf32>
    %11 = arith.addf %8, %10 : vector<96x512xf32>
    %cst_13 = arith.constant 0.000000e+00 : f32
    %12 = vector.broadcast %cst_13 : f32 to vector<96x512xf32>
    %13 = arith.maximumf %11, %12 : vector<96x512xf32>
    %c0_14 = arith.constant 0 : index
    %c0_15 = arith.constant 0 : index
    %14 = vector.load %arg9[%c0_14, %c0_15] : memref<96x512xf32, #tpu.memory_space<vmem>>, vector<96x512xf32>
    tpu.vector_store %arg9[%c0_14, %c0_15], %13 {strides = array<i32>} : memref<96x512xf32, #tpu.memory_space<vmem>>, vector<96x512xf32>,
    %c0_16 = arith.constant 0 : index
    %c0_17 = arith.constant 0 : index
    %15 = vector.load %arg4[%c0_16, %c0_17] : memref<144x96xf32, #tpu.memory_space<vmem>>, vector<144x96xf32>
    %c0_18 = arith.constant 0 : index
    %c0_19 = arith.constant 0 : index
    %16 = vector.load %arg9[%c0_18, %c0_19] : memref<96x512xf32, #tpu.memory_space<vmem>>, vector<96x512xf32>
    %cst_20 = arith.constant dense<0.000000e+00> : vector<144x512xf32>
    %17 = tpu.matmul %15, %16, %cst_20 {dimension_numbers = #tpu.dot_dimension_numbers<[1], [0], [0], [1], [0, 0, 1, 1], [], []>} : vector<144x96xf32>, vector<96x512xf32>, vector<144x512xf32> -> vector<144x512xf32>
    %c0_21 = arith.constant 0 : index
    %c0_22 = arith.constant 0 : index
    %18 = vector.load %arg10[%c0_21, %c0_22] : memref<144x512xf32, #tpu.memory_space<vmem>>, vector<144x512xf32>
    tpu.vector_store %arg10[%c0_21, %c0_22], %17 {strides = array<i32>} : memref<144x512xf32, #tpu.memory_space<vmem>>, vector<144x512xf32>,
    %c0_23 = arith.constant 0 : index
    %c0_24 = arith.constant 0 : index
    %19 = vector.load %arg5[%c0_23, %c0_24] : memref<16x512xf32, #tpu.memory_space<vmem>>, vector<16x512xf32>
    %c0_25 = arith.constant 0 : index
    %c0_26 = arith.constant 0 : index
    %20 = vector.load %arg10[%c0_25, %c0_26] : memref<144x512xf32, #tpu.memory_space<vmem>>, vector<16x512xf32>
    %c17_i32 = arith.constant 17 : i32
    %21 = tpu.dynamic_rotate %20 by %c17_i32 dim 1 : vector<16x512xf32>, i32 -> vector<16x512xf32>
    %c0_27 = arith.constant 0 : index
    %c0_28 = arith.constant 0 : index
    %22 = vector.load %arg6[%c0_27, %c0_28] : memref<9x512xf32, #tpu.memory_space<vmem>>, vector<1x512xf32>
    %23 = vector.broadcast %22 : vector<1x512xf32> to vector<16x512xf32>
    %24 = arith.mulf %21, %23 : vector<16x512xf32>
    %25 = arith.addf %19, %24 : vector<16x512xf32>
    %c16 = arith.constant 16 : index
    %c0_29 = arith.constant 0 : index
    %26 = vector.load %arg10[%c16, %c0_29] : memref<144x512xf32, #tpu.memory_space<vmem>>, vector<16x512xf32>
    %c16_i32 = arith.constant 16 : i32
    %27 = tpu.dynamic_rotate %26 by %c16_i32 dim 1 : vector<16x512xf32>, i32 -> vector<16x512xf32>
    %c1_30 = arith.constant 1 : index
    %c0_31 = arith.constant 0 : index
    %28 = vector.load %arg6[%c1_30, %c0_31] : memref<9x512xf32, #tpu.memory_space<vmem>>, vector<1x512xf32>
    %29 = vector.broadcast %28 : vector<1x512xf32> to vector<16x512xf32>
    %30 = arith.mulf %27, %29 : vector<16x512xf32>
    %31 = arith.addf %25, %30 : vector<16x512xf32>
    %c32 = arith.constant 32 : index
    %c0_32 = arith.constant 0 : index
    %32 = vector.load %arg10[%c32, %c0_32] : memref<144x512xf32, #tpu.memory_space<vmem>>, vector<16x512xf32>
    %c15_i32 = arith.constant 15 : i32
    %33 = tpu.dynamic_rotate %32 by %c15_i32 dim 1 : vector<16x512xf32>, i32 -> vector<16x512xf32>
    %c2 = arith.constant 2 : index
    %c0_33 = arith.constant 0 : index
    %34 = vector.load %arg6[%c2, %c0_33] : memref<9x512xf32, #tpu.memory_space<vmem>>, vector<1x512xf32>
    %35 = vector.broadcast %34 : vector<1x512xf32> to vector<16x512xf32>
    %36 = arith.mulf %33, %35 : vector<16x512xf32>
    %37 = arith.addf %31, %36 : vector<16x512xf32>
    %c48 = arith.constant 48 : index
    %c0_34 = arith.constant 0 : index
    %38 = vector.load %arg10[%c48, %c0_34] : memref<144x512xf32, #tpu.memory_space<vmem>>, vector<16x512xf32>
    %c1_i32 = arith.constant 1 : i32
    %39 = tpu.dynamic_rotate %38 by %c1_i32 dim 1 : vector<16x512xf32>, i32 -> vector<16x512xf32>
    %c3 = arith.constant 3 : index
    %c0_35 = arith.constant 0 : index
    %40 = vector.load %arg6[%c3, %c0_35] : memref<9x512xf32, #tpu.memory_space<vmem>>, vector<1x512xf32>
    %41 = vector.broadcast %40 : vector<1x512xf32> to vector<16x512xf32>
    %42 = arith.mulf %39, %41 : vector<16x512xf32>
    %43 = arith.addf %37, %42 : vector<16x512xf32>
    %c64 = arith.constant 64 : index
    %c0_36 = arith.constant 0 : index
    %44 = vector.load %arg10[%c64, %c0_36] : memref<144x512xf32, #tpu.memory_space<vmem>>, vector<16x512xf32>
    %45 = arith.addf %43, %44 : vector<16x512xf32>
    %c80 = arith.constant 80 : index
    %c0_37 = arith.constant 0 : index
    %46 = vector.load %arg10[%c80, %c0_37] : memref<144x512xf32, #tpu.memory_space<vmem>>, vector<16x512xf32>
    %c511_i32 = arith.constant 511 : i32
    %47 = tpu.dynamic_rotate %46 by %c511_i32 dim 1 : vector<16x512xf32>, i32 -> vector<16x512xf32>
    %c5 = arith.constant 5 : index
    %c0_38 = arith.constant 0 : index
    %48 = vector.load %arg6[%c5, %c0_38] : memref<9x512xf32, #tpu.memory_space<vmem>>, vector<1x512xf32>
    %49 = vector.broadcast %48 : vector<1x512xf32> to vector<16x512xf32>
    %50 = arith.mulf %47, %49 : vector<16x512xf32>
    %51 = arith.addf %45, %50 : vector<16x512xf32>
    %c96 = arith.constant 96 : index
    %c0_39 = arith.constant 0 : index
    %52 = vector.load %arg10[%c96, %c0_39] : memref<144x512xf32, #tpu.memory_space<vmem>>, vector<16x512xf32>
    %c497_i32 = arith.constant 497 : i32
    %53 = tpu.dynamic_rotate %52 by %c497_i32 dim 1 : vector<16x512xf32>, i32 -> vector<16x512xf32>
    %c6 = arith.constant 6 : index
    %c0_40 = arith.constant 0 : index
    %54 = vector.load %arg6[%c6, %c0_40] : memref<9x512xf32, #tpu.memory_space<vmem>>, vector<1x512xf32>
    %55 = vector.broadcast %54 : vector<1x512xf32> to vector<16x512xf32>
    %56 = arith.mulf %53, %55 : vector<16x512xf32>
    %57 = arith.addf %51, %56 : vector<16x512xf32>
    %c112 = arith.constant 112 : index
    %c0_41 = arith.constant 0 : index
    %58 = vector.load %arg10[%c112, %c0_41] : memref<144x512xf32, #tpu.memory_space<vmem>>, vector<16x512xf32>
    %c496_i32 = arith.constant 496 : i32
    %59 = tpu.dynamic_rotate %58 by %c496_i32 dim 1 : vector<16x512xf32>, i32 -> vector<16x512xf32>
    %c7 = arith.constant 7 : index
    %c0_42 = arith.constant 0 : index
    %60 = vector.load %arg6[%c7, %c0_42] : memref<9x512xf32, #tpu.memory_space<vmem>>, vector<1x512xf32>
    %61 = vector.broadcast %60 : vector<1x512xf32> to vector<16x512xf32>
    %62 = arith.mulf %59, %61 : vector<16x512xf32>
    %63 = arith.addf %57, %62 : vector<16x512xf32>
    %c128 = arith.constant 128 : index
    %c0_43 = arith.constant 0 : index
    %64 = vector.load %arg10[%c128, %c0_43] : memref<144x512xf32, #tpu.memory_space<vmem>>, vector<16x512xf32>
    %c495_i32 = arith.constant 495 : i32
    %65 = tpu.dynamic_rotate %64 by %c495_i32 dim 1 : vector<16x512xf32>, i32 -> vector<16x512xf32>
    %c8 = arith.constant 8 : index
    %c0_44 = arith.constant 0 : index
    %66 = vector.load %arg6[%c8, %c0_44] : memref<9x512xf32, #tpu.memory_space<vmem>>, vector<1x512xf32>
    %67 = vector.broadcast %66 : vector<1x512xf32> to vector<16x512xf32>
    %68 = arith.mulf %65, %67 : vector<16x512xf32>
    %69 = arith.addf %63, %68 : vector<16x512xf32>
    %70 = vector.extract_strided_slice %69 {offsets = [0, 0], sizes = [16, 256], strides = [1, 1]} : vector<16x512xf32> to vector<16x256xf32>
    %c0_45 = arith.constant 0 : index
    %c0_46 = arith.constant 0 : index
    %c0_47 = arith.constant 0 : index
    %71 = vector.load %arg7[%c0_45, %c0_46, %c0_47] : memref<2x48x256xf32, #tpu.memory_space<vmem>>, vector<1x16x256xf32>
    %72 = vector.shape_cast %71 : vector<1x16x256xf32> to vector<16x256xf32>
    %73 = vector.shape_cast %70 : vector<16x256xf32> to vector<1x16x256xf32>
    tpu.vector_store %arg7[%c0_45, %c0_46, %c0_47], %73 {strides = array<i32>} : memref<2x48x256xf32, #tpu.memory_space<vmem>>, vector<1x16x256xf32>,
    %c0_48 = arith.constant 0 : index
    %c0_49 = arith.constant 0 : index
    %c0_50 = arith.constant 0 : index
    %74 = vector.load %arg1[%c0_48, %c0_49, %c0_50] : memref<2x32x256xf32, #tpu.memory_space<vmem>>, vector<1x32x256xf32>
    %75 = vector.shape_cast %74 : vector<1x32x256xf32> to vector<32x256xf32>
    %c0_51 = arith.constant 0 : index
    %c16_52 = arith.constant 16 : index
    %c0_53 = arith.constant 0 : index
    %76 = vector.load %arg7[%c0_51, %c16_52, %c0_53] : memref<2x48x256xf32, #tpu.memory_space<vmem>>, vector<1x32x256xf32>
    %77 = vector.shape_cast %76 : vector<1x32x256xf32> to vector<32x256xf32>
    %78 = vector.shape_cast %75 : vector<32x256xf32> to vector<1x32x256xf32>
    tpu.vector_store %arg7[%c0_51, %c16_52, %c0_53], %78 {strides = array<i32>} : memref<2x48x256xf32, #tpu.memory_space<vmem>>, vector<1x32x256xf32>,
    %79 = vector.extract_strided_slice %69 {offsets = [0, 256], sizes = [16, 256], strides = [1, 1]} : vector<16x512xf32> to vector<16x256xf32>
    %c1_54 = arith.constant 1 : index
    %c0_55 = arith.constant 0 : index
    %c0_56 = arith.constant 0 : index
    %80 = vector.load %arg7[%c1_54, %c0_55, %c0_56] : memref<2x48x256xf32, #tpu.memory_space<vmem>>, vector<1x16x256xf32>
    %81 = vector.shape_cast %80 : vector<1x16x256xf32> to vector<16x256xf32>
    %82 = vector.shape_cast %79 : vector<16x256xf32> to vector<1x16x256xf32>
    tpu.vector_store %arg7[%c1_54, %c0_55, %c0_56], %82 {strides = array<i32>} : memref<2x48x256xf32, #tpu.memory_space<vmem>>, vector<1x16x256xf32>,
    %c1_57 = arith.constant 1 : index
    %c0_58 = arith.constant 0 : index
    %c0_59 = arith.constant 0 : index
    %83 = vector.load %arg1[%c1_57, %c0_58, %c0_59] : memref<2x32x256xf32, #tpu.memory_space<vmem>>, vector<1x32x256xf32>
    %84 = vector.shape_cast %83 : vector<1x32x256xf32> to vector<32x256xf32>
    %c1_60 = arith.constant 1 : index
    %c16_61 = arith.constant 16 : index
    %c0_62 = arith.constant 0 : index
    %85 = vector.load %arg7[%c1_60, %c16_61, %c0_62] : memref<2x48x256xf32, #tpu.memory_space<vmem>>, vector<1x32x256xf32>
    %86 = vector.shape_cast %85 : vector<1x32x256xf32> to vector<32x256xf32>
    %87 = vector.shape_cast %84 : vector<32x256xf32> to vector<1x32x256xf32>
    tpu.vector_store %arg7[%c1_60, %c16_61, %c0_62], %87 {strides = array<i32>} : memref<2x48x256xf32, #tpu.memory_space<vmem>>, vector<1x32x256xf32>,
    return
  }
  func.func @transform_0(%arg0: i32) -> (i32, i32, i32) {
    %c0_i32 = arith.constant 0 : i32
    %c0_i32_0 = arith.constant 0 : i32
    %c0_i32_1 = arith.constant 0 : i32
    %c0_i32_2 = arith.constant 0 : i32
    return %c0_i32, %c0_i32_0, %c0_i32_1 : i32, i32, i32
  }
  func.func @transform_1(%arg0: i32) -> (i32, i32) {
    %c0_i32 = arith.constant 0 : i32
    %c0_i32_0 = arith.constant 0 : i32
    %c0_i32_1 = arith.constant 0 : i32
    return %c0_i32, %c0_i32_0 : i32, i32
  }
  func.func @transform_2(%arg0: i32) -> (i32, i32) {
    %c0_i32 = arith.constant 0 : i32
    %c0_i32_0 = arith.constant 0 : i32
    %c0_i32_1 = arith.constant 0 : i32
    return %c0_i32, %c0_i32_0 : i32, i32
  }
  func.func @transform_3(%arg0: i32) -> (i32, i32) {
    %c0_i32 = arith.constant 0 : i32
    %c0_i32_0 = arith.constant 0 : i32
    %c0_i32_1 = arith.constant 0 : i32
    return %c0_i32, %c0_i32_0 : i32, i32
  }
  func.func @transform_4(%arg0: i32) -> (i32, i32) {
    %c0_i32 = arith.constant 0 : i32
    %c0_i32_0 = arith.constant 0 : i32
    %c0_i32_1 = arith.constant 0 : i32
    return %c0_i32, %c0_i32_0 : i32, i32
  }
  func.func @transform_5(%arg0: i32) -> (i32, i32) {
    %c0_i32 = arith.constant 0 : i32
    %c0_i32_0 = arith.constant 0 : i32
    %c0_i32_1 = arith.constant 0 : i32
    return %c0_i32, %c0_i32_0 : i32, i32
  }
  func.func @transform_6(%arg0: i32) -> (i32, i32, i32) {
    %c0_i32 = arith.constant 0 : i32
    %c0_i32_0 = arith.constant 0 : i32
    %c0_i32_1 = arith.constant 0 : i32
    %c0_i32_2 = arith.constant 0 : i32
    return %c0_i32, %c0_i32_0, %c0_i32_1 : i32, i32, i32
  }
}

</mosaic_0001>

<bundles_post_ra>
// kernel: _lambda_.1
= control target key start
LH: loop header
LB: loop body
LE: loop exit
PB: predicated region body
PF: predicated region fallthrough
CT: control target
= control target key end

     0   :  { %v1919_v3 = vmov 0.0   ;;  %v1920_v8 = vmov 0   ;;  %vm156_vm0 = vcmask 261120   ;;  %vm629_vm1 = vcmask 785408   ;;  %s1921_s13 = smov 17   ;;  %s1923_s14 = smov 15   ;;  %s2761_s0 = inlined_call_operand.vmem [shape: f32[2,32,256], index: 0, kind: input, shape index: {}]   ;;  %s2762_s1 = inlined_call_operand.vmem [shape: f32[96,32], index: 1, kind: input, shape index: {}]   ;;  %s2763_s2 = inlined_call_operand.vmem [shape: f32[96,1], index: 2, kind: input, shape index: {}]   ;;  %s2764_s3 = inlined_call_operand.vmem [shape: f32[144,96], index: 3, kind: input, shape index: {}]   ;;  %s2765_s6 = inlined_call_operand.vmem [shape: f32[2,48,256], index: 6, kind: output, shape index: {}]   ;;  %s2766_s5 = inlined_call_operand.vmem [shape: f32[9,512], index: 5, kind: input, shape index: {}]   ;;  %s2767_s4 = inlined_call_operand.vmem [shape: f32[16,512], index: 4, kind: input, shape index: {}]  }
   0x1   :  { %v24_v0 = vld [vmem:[%s2761_s0 + $0x8] sm:$0xff]  ;;  %v26_v1 = vld [vmem:[%s2761_s0 + $0x18] sm:$0xff]  ;;  %257 = vmatprep.mubr.f32.mxu0 %v1919_v3  ;;  %394 = vmatprep.mubr.f32.mxu1 %v1919_v3  ;;  %v23_v6 = vld [vmem:[%s2761_s0] sm:$0xff]  ;;  %s1924_s15 = smov 1   ;;  %s1925_s16 = smov 127  }
   0x2   :  { %v1749_v2 = vld [vmem:[%s2761_s0 + $0x48] sm:$0xff]  ;;  %v1843_v4 = vpack.c.bf16 %v26_v1, %v24_v0  ;;  %v1751_v5 = vld [vmem:[%s2761_s0 + $0x58] sm:$0xff]  ;;  %v25_v7 = vld [vmem:[%s2761_s0 + $0x10] sm:$0xff]  ;;  %1917 = vset.pattern.permute.xlu0 %v1920_v8  ;;  %1918 = vset.pattern.permute.xlu1 %v1920_v8  ;;  %s1926_s17 = smov 113   ;;  %s1927_s18 = smov 112  }
   0x3   :  { %v1851_v9 = vpack.c.bf16 %v1751_v5, %v1749_v2  ;;  %v1845_v10 = vpack.c.bf16 %v25_v7, %v23_v6  ;;  %v1748_v11 = vld [vmem:[%s2761_s0 + $0x40] sm:$0xff]  ;;  %v1750_v12 = vld [vmem:[%s2761_s0 + $0x50] sm:$0xff]  ;;  %v28_v13 = vld [vmem:[%s2761_s0 + $0x28] sm:$0xff]  ;;  %s1928_s28 = smov 111  }
   0x4   :  { %1844 = vmatprep.subr.bf16.mxu0 %v1843_v4  ;;  %v1853_v14 = vpack.c.bf16 %v1750_v12, %v1748_v11  ;;  %v30_v15 = vld [vmem:[%s2761_s0 + $0x38] sm:$0xff]  ;;  %v1753_v16 = vld [vmem:[%s2761_s0 + $0x68] sm:$0xff]  ;;  %v27_v20 = vld [vmem:[%s2761_s0 + $0x20] sm:$0xff] }
   0x5   :  { %v1755_v17 = vld [vmem:[%s2761_s0 + $0x78] sm:$0xff]  ;;  %1852 = vmatprep.subr.bf16.mxu1 %v1851_v9  ;;  %1846 = vmatpush1.bf16.msra.mxu0 %v1845_v10  ;;  %v1847_v18 = vpack.c.bf16 %v30_v15, %v28_v13  ;;  %v29_v21 = vld [vmem:[%s2761_s0 + $0x30] sm:$0xff]  ;;  %v1752_v22 = vld [vmem:[%s2761_s0 + $0x60] sm:$0xff] }
   0x6   :  { %v1855_v19 = vpack.c.bf16 %v1755_v17, %v1753_v16  ;;  %1854 = vmatpush1.bf16.msra.mxu1 %v1853_v14  ;;  %v1849_v23 = vpack.c.bf16 %v29_v21, %v27_v20  ;;  %v1754_v24 = vld [vmem:[%s2761_s0 + $0x70] sm:$0xff]  ;;  %v56_v26 = vld [vmem:[%s2762_s1] sm:$0xff]  ;;  %v85_v29 = vld [vmem:[%s2763_s2 + $0x8] sm:$0xff] }
   0x7   :  { %1848 = vmatprep.subr.bf16.mxu0 %v1847_v18  ;;  %v1857_v25 = vpack.c.bf16 %v1754_v24, %v1752_v22  ;;  %v84_v27 = vld [vmem:[%s2763_s2] sm:$0xff]  ;;  %v86_v28 = vld [vmem:[%s2763_s2 + $0x10] sm:$0xff]  ;;  %v57_v30 = vld [vmem:[%s2762_s1 + $0x8] sm:$0xff] }
   0x8   :  { %1856 = vmatprep.subr.bf16.mxu1 %v1855_v19  ;;  %98 = vperm.xlu0 %1917, %v84_v27   ;;  %v87_v31 = vld [vmem:[%s2763_s2 + $0x18] sm:$0xff]  ;;  %v88_v32 = vld [vmem:[%s2763_s2 + $0x20] sm:$0xff]  ;;  %v58_v33 = vld [vmem:[%s2762_s1 + $0x10] sm:$0xff] }
   0x9   :  { %1850 = vmatpush1.bf16.msra.mxu0 %v1849_v23  ;;  %108 = vperm.xlu1 %1918, %v86_v28   ;;  %v89_v34 = vld [vmem:[%s2763_s2 + $0x28] sm:$0xff]  ;;  %v90_v35 = vld [vmem:[%s2763_s2 + $0x30] sm:$0xff]  ;;  %v59_v36 = vld [vmem:[%s2762_s1 + $0x18] sm:$0xff] }
   0xa   :  { %1858 = vmatpush1.bf16.msra.mxu1 %v1857_v25  ;;  %v91_v37 = vld [vmem:[%s2763_s2 + $0x38] sm:$0xff]  ;;  %v92_v38 = vld [vmem:[%s2763_s2 + $0x40] sm:$0xff]  ;;  %v93_v40 = vld [vmem:[%s2763_s2 + $0x48] sm:$0xff] }
   0xb   :  { %v60_v39 = vld [vmem:[%s2762_s1 + $0x20] sm:$0xff]  ;;  %v94_v41 = vld [vmem:[%s2763_s2 + $0x50] sm:$0xff]  ;;  %v61_v42 = vld [vmem:[%s2762_s1 + $0x28] sm:$0xff] }
   0xc   :  { %1756 = vmatmul.mubr.msk.f32.vlgmr.msra.gmra.mrb[0].mxu0 %vm156_vm0, %v56_v26  ;;  %103 = vperm.xlu0 %1917, %v85_v29   ;;  %v95_v43 = vld [vmem:[%s2763_s2 + $0x58] sm:$0xff]  ;;  %v62_v44 = vld [vmem:[%s2762_s1 + $0x30] sm:$0xff]  ;;  %v64_v46 = vld [vmem:[%s2762_s1 + $0x40] sm:$0xff] }
   0xd   :  { %1768 = vmatmul.mubr.msk.f32.vlgmr.msra.gmra.mrb[0].mxu1 %vm156_vm0, %v56_v26  ;;  %263 = vmatprep.mubr.f32.mxu0 %v1919_v3  ;;  %v63_v45 = vld [vmem:[%s2762_s1 + $0x38] sm:$0xff]  ;;  %v65_v47 = vld [vmem:[%s2762_s1 + $0x48] sm:$0xff]  ;;  %v66_v48 = vld [vmem:[%s2762_s1 + $0x50] sm:$0xff] }
   0xe   :  { %400 = vmatprep.mubr.f32.mxu1 %v1919_v3  ;;  %113 = vperm.xlu1 %1918, %v87_v31   ;;  %v67_v49 = vld [vmem:[%s2762_s1 + $0x58] sm:$0xff] }
  0x10   :  { %1757 = vmatmul.mubr.msk.f32.gmra.mrb[2].mxu0 %vm156_vm0, %v57_v30  ;;  %118 = vperm.xlu0 %1917, %v88_v32  }
  0x11   :  { %1769 = vmatmul.mubr.msk.f32.gmra.mrb[2].mxu1 %vm156_vm0, %v57_v30  ;;  %269 = vmatprep.mubr.f32.mxu0 %v1919_v3 }
  0x12   :  { %406 = vmatprep.mubr.f32.mxu1 %v1919_v3  ;;  %123 = vperm.xlu1 %1918, %v89_v34  }
  0x14   :  { %1758 = vmatmul.mubr.msk.f32.gmra.mrb[4].mxu0 %vm156_vm0, %v58_v33  ;;  %128 = vperm.xlu0 %1917, %v90_v35  }
  0x15   :  { %1770 = vmatmul.mubr.msk.f32.gmra.mrb[4].mxu1 %vm156_vm0, %v58_v33  ;;  %275 = vmatprep.mubr.f32.mxu0 %v1919_v3 }
  0x16   :  { %412 = vmatprep.mubr.f32.mxu1 %v1919_v3  ;;  %133 = vperm.xlu1 %1918, %v91_v37  }
  0x18   :  { %1759 = vmatmul.mubr.msk.f32.gmra.mrb[6].mxu0 %vm156_vm0, %v59_v36  ;;  %138 = vperm.xlu0 %1917, %v92_v38  }
  0x19   :  { %1771 = vmatmul.mubr.msk.f32.gmra.mrb[6].mxu1 %vm156_vm0, %v59_v36  ;;  %281 = vmatprep.mubr.f32.mxu0 %v1919_v3 }
  0x1a   :  { %418 = vmatprep.mubr.f32.mxu1 %v1919_v3  ;;  %143 = vperm.xlu1 %1918, %v93_v40  }
  0x1c   :  { %1760 = vmatmul.mubr.msk.f32.gmra.mrb[8].mxu0 %vm156_vm0, %v60_v39  ;;  %148 = vperm.xlu0 %1917, %v94_v41  }
  0x1d   :  { %1772 = vmatmul.mubr.msk.f32.gmra.mrb[8].mxu1 %vm156_vm0, %v60_v39  ;;  %287 = vmatprep.mubr.f32.mxu0 %v1919_v3 }
  0x1e   :  { %424 = vmatprep.mubr.f32.mxu1 %v1919_v3  ;;  %153 = vperm.xlu1 %1918, %v95_v43  }
  0x20   :  { %1761 = vmatmul.mubr.msk.f32.gmra.mrb[10].mxu0 %vm156_vm0, %v61_v42 }
  0x21   :  { %1773 = vmatmul.mubr.msk.f32.gmra.mrb[10].mxu1 %vm156_vm0, %v61_v42  ;;  %293 = vmatprep.mubr.f32.mxu0 %v1919_v3 }
  0x22   :  { %430 = vmatprep.mubr.f32.mxu1 %v1919_v3 }
  0x24   :  { %1762 = vmatmul.mubr.msk.f32.gmra.mrb[12].mxu0 %vm156_vm0, %v62_v44 }
  0x25   :  { %1774 = vmatmul.mubr.msk.f32.gmra.mrb[12].mxu1 %vm156_vm0, %v62_v44  ;;  %299 = vmatprep.mubr.f32.mxu0 %v1919_v3 }
  0x26   :  { %436 = vmatprep.mubr.f32.mxu1 %v1919_v3 }
  0x28   :  { %1763 = vmatmul.mubr.msk.f32.gmra.mrb[14].mxu0 %vm156_vm0, %v63_v45 }
  0x29   :  { %1775 = vmatmul.mubr.msk.f32.gmra.mrb[14].mxu1 %vm156_vm0, %v63_v45  ;;  %305 = vmatprep.mubr.f32.mxu0 %v1919_v3 }
  0x2a   :  { %442 = vmatprep.mubr.f32.mxu1 %v1919_v3 }
  0x2c   :  { %1764 = vmatmul.mubr.msk.f32.gmra.mrb[16].mxu0 %vm156_vm0, %v64_v46 }
  0x2d   :  { %1776 = vmatmul.mubr.msk.f32.gmra.mrb[16].mxu1 %vm156_vm0, %v64_v46  ;;  %311 = vmatprep.mubr.f32.mxu0 %v1919_v3 }
  0x2e   :  { %448 = vmatprep.mubr.f32.mxu1 %v1919_v3 }
  0x30   :  { %1765 = vmatmul.mubr.msk.f32.gmra.mrb[18].mxu0 %vm156_vm0, %v65_v47 }
  0x31   :  { %1777 = vmatmul.mubr.msk.f32.gmra.mrb[18].mxu1 %vm156_vm0, %v65_v47  ;;  %317 = vmatprep.mubr.f32.mxu0 %v1919_v3 }
  0x32   :  { %454 = vmatprep.mubr.f32.mxu1 %v1919_v3 }
  0x34   :  { %1766 = vmatmul.mubr.msk.f32.gmra.mrb[20].mxu0 %vm156_vm0, %v66_v48 }
  0x35   :  { %1778 = vmatmul.mubr.msk.f32.gmra.mrb[20].mxu1 %vm156_vm0, %v66_v48  ;;  %323 = vmatprep.mubr.f32.mxu0 %v1919_v3 }
  0x36   :  { %460 = vmatprep.mubr.f32.mxu1 %v1919_v3 }
  0x38   :  { %1767 = vmatmul.mubr.msk.f32.gmra.mrb[22].mxu0 %vm156_vm0, %v67_v49 }
  0x39   :  { %1779 = vmatmul.mubr.msk.f32.gmra.mrb[22].mxu1 %vm156_vm0, %v67_v49  ;;  %748 = vmatprep.mubr.f32.mxu0 %v1919_v3 }
  0x3a   :  { %921 = vmatprep.mubr.f32.mxu1 %v1919_v3 }
  0x87   :  { %v99_v50 = vpop.permute.xlu0 %98 }
  0x88   :  { %v109_v0 = vpop.permute.xlu1 %108 }
  0x8b   :  { %v104_v54 = vpop.permute.xlu0 %103 }
  0x8d   :  { %v114_v25 = vpop.permute.xlu1 %113 }
  0x8f   :  { %v119_v39 = vpop.permute.xlu0 %118 }
  0xdf   :  { %v259_v51 = vpop.f32.mrb[0].mxu0 }
  0xe0   :  { %v396_v52 = vpop.f32.mrb[0].mxu1  ;;  %v261_v53 = vpop.f32.mrb[1].mxu0  ;;  %v260_v57 = vadd.f32 %v259_v51, %v99_v50 }
  0xe1   :  { %v397_v55 = vadd.f32 %v396_v52, %v99_v50  ;;  %v398_v56 = vpop.f32.mrb[1].mxu1  ;;  %v262_v59 = vadd.f32 %v261_v53, %v99_v50 }
  0xe2   :  { %v399_v58 = vadd.f32 %v398_v56, %v99_v50  ;;  %v467_v6 = vmax.f32 %v260_v57, 0.0 }
  0xe3   :  { %v265_v60 = vpop.f32.mrb[2].mxu0  ;;  %v469_v1 = vmax.f32 %v397_v55, 0.0  ;;  %v468_v10 = vmax.f32 %v262_v59, 0.0  ;;  %v124_v55 = vpop.permute.xlu1 %123 }
  0xe4   :  { %v266_v61 = vadd.f32 %v265_v60, %v104_v54  ;;  %v402_v62 = vpop.f32.mrb[2].mxu1  ;;  %v267_v63 = vpop.f32.mrb[3].mxu0  ;;  %v470_v7 = vmax.f32 %v399_v58, 0.0 }
  0xe5   :  { %v403_v2 = vadd.f32 %v402_v62, %v104_v54  ;;  %v268_v4 = vadd.f32 %v267_v63, %v104_v54  ;;  %v404_v5 = vpop.f32.mrb[3].mxu1 }
  0xe6   :  { %v471_v8 = vmax.f32 %v266_v61, 0.0  ;;  %v405_v9 = vadd.f32 %v404_v5, %v104_v54 }
  0xe7   :  { %v473_v11 = vmax.f32 %v403_v2, 0.0  ;;  %v472_v12 = vmax.f32 %v268_v4, 0.0  ;;  %v271_v13 = vpop.f32.mrb[4].mxu0 }
  0xe8   :  { %v1861_v14 = vpack.c.bf16 %v471_v8, %v467_v6  ;;  %v474_v15 = vmax.f32 %v405_v9, 0.0  ;;  %v408_v16 = vpop.f32.mrb[4].mxu1  ;;  %v273_v17 = vpop.f32.mrb[5].mxu0  ;;  %v272_v23 = vadd.f32 %v271_v13, %v109_v0 }
  0xe9   :  { %v1885_v18 = vpack.c.bf16 %v473_v11, %v469_v1  ;;  %v1859_v19 = vpack.c.bf16 %v472_v12, %v468_v10  ;;  %v409_v20 = vadd.f32 %v408_v16, %v109_v0  ;;  %v410_v21 = vpop.f32.mrb[5].mxu1  ;;  %v274_v26 = vadd.f32 %v273_v17, %v109_v0 }
  0xea   :  { %v1883_v22 = vpack.c.bf16 %v474_v15, %v470_v7  ;;  %v411_v24 = vadd.f32 %v410_v21, %v109_v0  ;;  %v475_v35 = vmax.f32 %v272_v23, 0.0 }
  0xeb   :  { %v277_v27 = vpop.f32.mrb[6].mxu0  ;;  %1860 = vmatprep.subr.bf16.mxu0 %v1859_v19  ;;  %v477_v31 = vmax.f32 %v409_v20, 0.0  ;;  %v476_v40 = vmax.f32 %v274_v26, 0.0  ;;  %v134_v20 = vpop.permute.xlu1 %133 }
  0xec   :  { %v278_v28 = vadd.f32 %v277_v27, %v114_v25  ;;  %v414_v29 = vpop.f32.mrb[6].mxu1  ;;  %1884 = vmatprep.subr.bf16.mxu1 %v1883_v22  ;;  %v279_v30 = vpop.f32.mrb[7].mxu0  ;;  %1862 = vmatpush1.bf16.msra.mxu0 %v1861_v14  ;;  %v478_v36 = vmax.f32 %v411_v24, 0.0 }
  0xed   :  { %v415_v32 = vadd.f32 %v414_v29, %v114_v25  ;;  %v280_v33 = vadd.f32 %v279_v30, %v114_v25  ;;  %v416_v34 = vpop.f32.mrb[7].mxu1  ;;  %1886 = vmatpush1.bf16.msra.mxu1 %v1885_v18  ;;  %v129_v14 = vpop.permute.xlu0 %128 }
  0xee   :  { %v479_v37 = vmax.f32 %v278_v28, 0.0  ;;  %v417_v38 = vadd.f32 %v416_v34, %v114_v25 }
  0xef   :  { %v481_v41 = vmax.f32 %v415_v32, 0.0  ;;  %v480_v42 = vmax.f32 %v280_v33, 0.0  ;;  %v283_v43 = vpop.f32.mrb[8].mxu0 }
  0xf0   :  { %v1865_v44 = vpack.c.bf16 %v479_v37, %v475_v35  ;;  %v482_v45 = vmax.f32 %v417_v38, 0.0  ;;  %v420_v46 = vpop.f32.mrb[8].mxu1  ;;  %v285_v47 = vpop.f32.mrb[9].mxu0  ;;  %v284_v53 = vadd.f32 %v283_v43, %v119_v39 }
  0xf1   :  { %v1889_v48 = vpack.c.bf16 %v481_v41, %v477_v31  ;;  %v1863_v49 = vpack.c.bf16 %v480_v42, %v476_v40  ;;  %v421_v50 = vadd.f32 %v420_v46, %v119_v39  ;;  %v422_v51 = vpop.f32.mrb[9].mxu1  ;;  %v286_v56 = vadd.f32 %v285_v47, %v119_v39 }
  0xf2   :  { %v1887_v52 = vpack.c.bf16 %v482_v45, %v478_v36  ;;  %v423_v54 = vadd.f32 %v422_v51, %v119_v39  ;;  %v483_v1 = vmax.f32 %v284_v53, 0.0 }
  0xf3   :  { %v289_v57 = vpop.f32.mrb[10].mxu0  ;;  %1864 = vmatprep.subr.bf16.mxu0 %v1863_v49  ;;  %v485_v61 = vmax.f32 %v421_v50, 0.0  ;;  %v484_v6 = vmax.f32 %v286_v56, 0.0  ;;  %v144_v50 = vpop.permute.xlu1 %143 }
  0xf4   :  { %v290_v58 = vadd.f32 %v289_v57, %v124_v55  ;;  %v426_v59 = vpop.f32.mrb[10].mxu1  ;;  %1888 = vmatprep.subr.bf16.mxu1 %v1887_v52  ;;  %v291_v60 = vpop.f32.mrb[11].mxu0  ;;  %1866 = vmatpush1.bf16.msra.mxu0 %v1865_v44  ;;  %v486_v2 = vmax.f32 %v423_v54, 0.0 }
  0xf5   :  { %v427_v62 = vadd.f32 %v426_v59, %v124_v55  ;;  %v292_v63 = vadd.f32 %v291_v60, %v124_v55  ;;  %v428_v0 = vpop.f32.mrb[11].mxu1  ;;  %1890 = vmatpush1.bf16.msra.mxu1 %v1889_v48  ;;  %v139_v44 = vpop.permute.xlu0 %138 }
  0xf6   :  { %v487_v4 = vmax.f32 %v290_v58, 0.0  ;;  %v429_v5 = vadd.f32 %v428_v0, %v124_v55 }
  0xf7   :  { %v489_v7 = vmax.f32 %v427_v62, 0.0  ;;  %v488_v8 = vmax.f32 %v292_v63, 0.0  ;;  %v295_v9 = vpop.f32.mrb[12].mxu0 }
  0xf8   :  { %v1869_v10 = vpack.c.bf16 %v487_v4, %v483_v1  ;;  %v490_v11 = vmax.f32 %v429_v5, 0.0  ;;  %v432_v12 = vpop.f32.mrb[12].mxu1  ;;  %v297_v13 = vpop.f32.mrb[13].mxu0  ;;  %v296_v19 = vadd.f32 %v295_v9, %v129_v14 }
  0xf9   :  { %v1893_v15 = vpack.c.bf16 %v489_v7, %v485_v61  ;;  %v1867_v16 = vpack.c.bf16 %v488_v8, %v484_v6  ;;  %v434_v17 = vpop.f32.mrb[13].mxu1  ;;  %v433_v21 = vadd.f32 %v432_v12, %v129_v14  ;;  %v298_v22 = vadd.f32 %v297_v13, %v129_v14 }
  0xfa   :  { %v1891_v18 = vpack.c.bf16 %v490_v11, %v486_v2  ;;  %v435_v24 = vadd.f32 %v434_v17, %v129_v14  ;;  %v491_v31 = vmax.f32 %v296_v19, 0.0  ;;  %v149_v11 = vpop.permute.xlu0 %148  ;;  %v154_v17 = vpop.permute.xlu1 %153 }
  0xfb   :  { %v301_v23 = vpop.f32.mrb[14].mxu0  ;;  %1868 = vmatprep.subr.bf16.mxu0 %v1867_v16  ;;  %v493_v34 = vmax.f32 %v433_v21, 0.0  ;;  %v492_v35 = vmax.f32 %v298_v22, 0.0 }
  0xfc   :  { %v302_v25 = vadd.f32 %v301_v23, %v134_v20  ;;  %v438_v26 = vpop.f32.mrb[14].mxu1  ;;  %1892 = vmatprep.subr.bf16.mxu1 %v1891_v18  ;;  %v303_v27 = vpop.f32.mrb[15].mxu0  ;;  %1870 = vmatpush1.bf16.msra.mxu0 %v1869_v10  ;;  %v494_v39 = vmax.f32 %v435_v24, 0.0 }
  0xfd   :  { %v439_v28 = vadd.f32 %v438_v26, %v134_v20  ;;  %v304_v29 = vadd.f32 %v303_v27, %v134_v20  ;;  %v440_v30 = vpop.f32.mrb[15].mxu1  ;;  %1894 = vmatpush1.bf16.msra.mxu1 %v1893_v15 }
  0xfe   :  { %v495_v32 = vmax.f32 %v302_v25, 0.0  ;;  %v441_v33 = vadd.f32 %v440_v30, %v134_v20 }
  0xff   :  { %v497_v36 = vmax.f32 %v439_v28, 0.0  ;;  %v496_v37 = vmax.f32 %v304_v29, 0.0  ;;  %v307_v38 = vpop.f32.mrb[16].mxu0 }
 0x100   :  { %v1873_v40 = vpack.c.bf16 %v495_v32, %v491_v31  ;;  %v498_v41 = vmax.f32 %v441_v33, 0.0  ;;  %v444_v42 = vpop.f32.mrb[16].mxu1  ;;  %v309_v43 = vpop.f32.mrb[17].mxu0  ;;  %v308_v49 = vadd.f32 %v307_v38, %v139_v44 }
 0x101   :  { %v1897_v45 = vpack.c.bf16 %v497_v36, %v493_v34  ;;  %v1871_v46 = vpack.c.bf16 %v496_v37, %v492_v35  ;;  %v446_v47 = vpop.f32.mrb[17].mxu1  ;;  %v445_v51 = vadd.f32 %v444_v42, %v139_v44  ;;  %v310_v52 = vadd.f32 %v309_v43, %v139_v44  ;;  %v564_v42 = vld [vmem:[%s2764_s3 + $0x8] sm:$0xff]  ;;  %v565_v43 = vld [vmem:[%s2764_s3 + $0x10] sm:$0xff] }
 0x102   :  { %v1895_v48 = vpack.c.bf16 %v498_v41, %v494_v39  ;;  %v447_v54 = vadd.f32 %v446_v47, %v139_v44  ;;  %v499_v61 = vmax.f32 %v308_v49, 0.0  ;;  %v563_v41 = vld [vmem:[%s2764_s3] sm:$0xff]  ;;  %v566_v44 = vld [vmem:[%s2764_s3 + $0x18] sm:$0xff]  ;;  %v569_v47 = vld [vmem:[%s2764_s3 + $0x30] sm:$0xff] }
 0x103   :  { %v313_v53 = vpop.f32.mrb[18].mxu0  ;;  %1872 = vmatprep.subr.bf16.mxu0 %v1871_v46  ;;  %v501_v0 = vmax.f32 %v445_v51, 0.0  ;;  %v500_v1 = vmax.f32 %v310_v52, 0.0  ;;  %v568_v46 = vld [vmem:[%s2764_s3 + $0x28] sm:$0xff]  ;;  %v571_v49 = vld [vmem:[%s2764_s3 + $0x40] sm:$0xff]  ;;  %v573_v51 = vld [vmem:[%s2764_s3 + $0x50] sm:$0xff] }
 0x104   :  { %v314_v55 = vadd.f32 %v313_v53, %v144_v50  ;;  %v450_v56 = vpop.f32.mrb[18].mxu1  ;;  %1896 = vmatprep.subr.bf16.mxu1 %v1895_v48  ;;  %v315_v57 = vpop.f32.mrb[19].mxu0  ;;  %1874 = vmatpush1.bf16.msra.mxu0 %v1873_v40  ;;  %v502_v6 = vmax.f32 %v447_v54, 0.0  ;;  %v570_v48 = vld [vmem:[%s2764_s3 + $0x38] sm:$0xff]  ;;  %v575_v53 = vld [vmem:[%s2764_s3 + $0x60] sm:$0xff]  ;;  %v576_v54 = vld [vmem:[%s2764_s3 + $0x68] sm:$0xff] }
 0x105   :  { %v451_v58 = vadd.f32 %v450_v56, %v144_v50  ;;  %v316_v59 = vadd.f32 %v315_v57, %v144_v50  ;;  %v452_v60 = vpop.f32.mrb[19].mxu1  ;;  %1898 = vmatpush1.bf16.msra.mxu1 %v1897_v45  ;;  %v567_v45 = vld [vmem:[%s2764_s3 + $0x20] sm:$0xff]  ;;  %v574_v52 = vld [vmem:[%s2764_s3 + $0x58] sm:$0xff] }
 0x106   :  { %v503_v62 = vmax.f32 %v314_v55, 0.0  ;;  %v453_v63 = vadd.f32 %v452_v60, %v144_v50  ;;  %v572_v50 = vld [vmem:[%s2764_s3 + $0x48] sm:$0xff]  ;;  %v577_v55 = vld [vmem:[%s2764_s3 + $0x70] sm:$0xff]  ;;  %v578_v56 = vld [vmem:[%s2764_s3 + $0x78] sm:$0xff] }
 0x107   :  { %v505_v2 = vmax.f32 %v451_v58, 0.0  ;;  %v504_v4 = vmax.f32 %v316_v59, 0.0  ;;  %v319_v5 = vpop.f32.mrb[20].mxu0  ;;  %v579_v57 = vld [vmem:[%s2764_s3 + $0x80] sm:$0xff]  ;;  %v580_v58 = vld [vmem:[%s2764_s3 + $0x88] sm:$0xff]  ;;  %s1922_s3 = smov 16  }
 0x108   :  { %v1877_v7 = vpack.c.bf16 %v503_v62, %v499_v61  ;;  %v506_v8 = vmax.f32 %v453_v63, 0.0  ;;  %v456_v9 = vpop.f32.mrb[20].mxu1  ;;  %v321_v10 = vpop.f32.mrb[21].mxu0  ;;  %v320_v16 = vadd.f32 %v319_v5, %v149_v11 }
 0x109   :  { %v1901_v12 = vpack.c.bf16 %v505_v2, %v501_v0  ;;  %v1875_v13 = vpack.c.bf16 %v504_v4, %v500_v1  ;;  %v458_v14 = vpop.f32.mrb[21].mxu1  ;;  %v457_v18 = vadd.f32 %v456_v9, %v149_v11  ;;  %v322_v19 = vadd.f32 %v321_v10, %v149_v11 }
 0x10a   :  { %v1899_v15 = vpack.c.bf16 %v506_v8, %v502_v6  ;;  %v459_v21 = vadd.f32 %v458_v14, %v149_v11  ;;  %v507_v28 = vmax.f32 %v320_v16, 0.0 }
 0x10b   :  { %v325_v20 = vpop.f32.mrb[22].mxu0  ;;  %1876 = vmatprep.subr.bf16.mxu0 %v1875_v13  ;;  %v509_v31 = vmax.f32 %v457_v18, 0.0  ;;  %v508_v32 = vmax.f32 %v322_v19, 0.0 }
 0x10c   :  { %v326_v22 = vadd.f32 %v325_v20, %v154_v17  ;;  %v462_v23 = vpop.f32.mrb[22].mxu1  ;;  %1900 = vmatprep.subr.bf16.mxu1 %v1899_v15  ;;  %v327_v24 = vpop.f32.mrb[23].mxu0  ;;  %1878 = vmatpush1.bf16.msra.mxu0 %v1877_v7  ;;  %v510_v35 = vmax.f32 %v459_v21, 0.0 }
 0x10d   :  { %v463_v25 = vadd.f32 %v462_v23, %v154_v17  ;;  %v328_v26 = vadd.f32 %v327_v24, %v154_v17  ;;  %v464_v27 = vpop.f32.mrb[23].mxu1  ;;  %1902 = vmatpush1.bf16.msra.mxu1 %v1901_v12 }
 0x10e   :  { %v511_v29 = vmax.f32 %v326_v22, 0.0  ;;  %v465_v30 = vadd.f32 %v464_v27, %v154_v17 }
 0x10f   :  { %v513_v33 = vmax.f32 %v463_v25, 0.0  ;;  %v512_v34 = vmax.f32 %v328_v26, 0.0 }
 0x110   :  { %v1881_v36 = vpack.c.bf16 %v511_v29, %v507_v28  ;;  %v514_v37 = vmax.f32 %v465_v30, 0.0 }
 0x111   :  { %v1905_v38 = vpack.c.bf16 %v513_v33, %v509_v31  ;;  %v1879_v39 = vpack.c.bf16 %v512_v34, %v508_v32 }
 0x112   :  { %v1903_v40 = vpack.c.bf16 %v514_v37, %v510_v35 }
 0x113   :  { %1880 = vmatprep.subr.bf16.mxu0 %v1879_v39 }
 0x114   :  { %1904 = vmatprep.subr.bf16.mxu1 %v1903_v40  ;;  %1882 = vmatpush1.bf16.msra.mxu0 %v1881_v36 }
 0x115   :  { %1906 = vmatpush1.bf16.msra.mxu1 %v1905_v38 }
 0x117   :  { %1780 = vmatmul.mubr.msk.f32.vlgmr.msra.gmra.mrb[24].mxu0 %vm629_vm1, %v563_v41 }
 0x118   :  { %754 = vmatprep.mubr.f32.mxu0 %v1919_v3  ;;  %1798 = vmatmul.mubr.msk.f32.vlgmr.msra.gmra.mrb[24].mxu1 %vm629_vm1, %v563_v41 }
 0x119   :  { %927 = vmatprep.mubr.f32.mxu1 %v1919_v3 }
 0x11b   :  { %1781 = vmatmul.mubr.msk.f32.gmra.mrb[26].mxu0 %vm629_vm1, %v564_v42 }
 0x11c   :  { %1799 = vmatmul.mubr.msk.f32.gmra.mrb[26].mxu1 %vm629_vm1, %v564_v42  ;;  %760 = vmatprep.mubr.f32.mxu0 %v1919_v3 }
 0x11d   :  { %933 = vmatprep.mubr.f32.mxu1 %v1919_v3 }
 0x11f   :  { %1782 = vmatmul.mubr.msk.f32.gmra.mrb[28].mxu0 %vm629_vm1, %v565_v43 }
 0x120   :  { %766 = vmatprep.mubr.f32.mxu0 %v1919_v3  ;;  %1800 = vmatmul.mubr.msk.f32.gmra.mrb[28].mxu1 %vm629_vm1, %v565_v43 }
 0x121   :  { %939 = vmatprep.mubr.f32.mxu1 %v1919_v3 }
 0x123   :  { %1783 = vmatmul.mubr.msk.f32.gmra.mrb[30].mxu0 %vm629_vm1, %v566_v44 }
 0x124   :  { %1801 = vmatmul.mubr.msk.f32.gmra.mrb[30].mxu1 %vm629_vm1, %v566_v44  ;;  %772 = vmatprep.mubr.f32.mxu0 %v1919_v3 }
 0x125   :  { %945 = vmatprep.mubr.f32.mxu1 %v1919_v3 }
 0x127   :  { %1784 = vmatmul.mubr.msk.f32.gmra.mrb[32].mxu0 %vm629_vm1, %v567_v45 }
 0x128   :  { %778 = vmatprep.mubr.f32.mxu0 %v1919_v3  ;;  %1802 = vmatmul.mubr.msk.f32.gmra.mrb[32].mxu1 %vm629_vm1, %v567_v45 }
 0x129   :  { %951 = vmatprep.mubr.f32.mxu1 %v1919_v3 }
 0x12b   :  { %1785 = vmatmul.mubr.msk.f32.gmra.mrb[34].mxu0 %vm629_vm1, %v568_v46 }
 0x12c   :  { %1803 = vmatmul.mubr.msk.f32.gmra.mrb[34].mxu1 %vm629_vm1, %v568_v46  ;;  %784 = vmatprep.mubr.f32.mxu0 %v1919_v3 }
 0x12d   :  { %957 = vmatprep.mubr.f32.mxu1 %v1919_v3 }
 0x12f   :  { %1786 = vmatmul.mubr.msk.f32.gmra.mrb[36].mxu0 %vm629_vm1, %v569_v47 }
 0x130   :  { %790 = vmatprep.mubr.f32.mxu0 %v1919_v3  ;;  %1804 = vmatmul.mubr.msk.f32.gmra.mrb[36].mxu1 %vm629_vm1, %v569_v47 }
 0x131   :  { %963 = vmatprep.mubr.f32.mxu1 %v1919_v3 }
 0x133   :  { %1787 = vmatmul.mubr.msk.f32.gmra.mrb[38].mxu0 %vm629_vm1, %v570_v48 }
 0x134   :  { %796 = vmatprep.mubr.f32.mxu0 %v1919_v3  ;;  %1805 = vmatmul.mubr.msk.f32.gmra.mrb[38].mxu1 %vm629_vm1, %v570_v48 }
 0x135   :  { %969 = vmatprep.mubr.f32.mxu1 %v1919_v3 }
 0x137   :  { %1788 = vmatmul.mubr.msk.f32.gmra.mrb[40].mxu0 %vm629_vm1, %v571_v49 }
 0x138   :  { %802 = vmatprep.mubr.f32.mxu0 %v1919_v3  ;;  %1806 = vmatmul.mubr.msk.f32.gmra.mrb[40].mxu1 %vm629_vm1, %v571_v49 }
 0x139   :  { %975 = vmatprep.mubr.f32.mxu1 %v1919_v3 }
 0x13b   :  { %1789 = vmatmul.mubr.msk.f32.gmra.mrb[42].mxu0 %vm629_vm1, %v572_v50 }
 0x13c   :  { %808 = vmatprep.mubr.f32.mxu0 %v1919_v3  ;;  %1807 = vmatmul.mubr.msk.f32.gmra.mrb[42].mxu1 %vm629_vm1, %v572_v50 }
 0x13d   :  { %981 = vmatprep.mubr.f32.mxu1 %v1919_v3 }
 0x13f   :  { %1790 = vmatmul.mubr.msk.f32.gmra.mrb[44].mxu0 %vm629_vm1, %v573_v51 }
 0x140   :  { %814 = vmatprep.mubr.f32.mxu0 %v1919_v3  ;;  %1808 = vmatmul.mubr.msk.f32.gmra.mrb[44].mxu1 %vm629_vm1, %v573_v51 }
 0x141   :  { %987 = vmatprep.mubr.f32.mxu1 %v1919_v3 }
 0x143   :  { %1791 = vmatmul.mubr.msk.f32.gmra.mrb[46].mxu0 %vm629_vm1, %v574_v52 }
 0x144   :  { %1809 = vmatmul.mubr.msk.f32.gmra.mrb[46].mxu1 %vm629_vm1, %v574_v52  ;;  %820 = vmatprep.mubr.f32.mxu0 %v1919_v3 }
 0x145   :  { %993 = vmatprep.mubr.f32.mxu1 %v1919_v3 }
 0x147   :  { %1792 = vmatmul.mubr.msk.f32.gmra.mrb[48].mxu0 %vm629_vm1, %v575_v53 }
 0x148   :  { %826 = vmatprep.mubr.f32.mxu0 %v1919_v3  ;;  %1810 = vmatmul.mubr.msk.f32.gmra.mrb[48].mxu1 %vm629_vm1, %v575_v53 }
 0x149   :  { %999 = vmatprep.mubr.f32.mxu1 %v1919_v3 }
 0x14b   :  { %1793 = vmatmul.mubr.msk.f32.gmra.mrb[50].mxu0 %vm629_vm1, %v576_v54 }
 0x14c   :  { %1811 = vmatmul.mubr.msk.f32.gmra.mrb[50].mxu1 %vm629_vm1, %v576_v54  ;;  %832 = vmatprep.mubr.f32.mxu0 %v1919_v3 }
 0x14d   :  { %1005 = vmatprep.mubr.f32.mxu1 %v1919_v3 }
 0x14f   :  { %1794 = vmatmul.mubr.msk.f32.gmra.mrb[52].mxu0 %vm629_vm1, %v577_v55 }
 0x150   :  { %838 = vmatprep.mubr.f32.mxu0 %v1919_v3  ;;  %1812 = vmatmul.mubr.msk.f32.gmra.mrb[52].mxu1 %vm629_vm1, %v577_v55 }
 0x151   :  { %1011 = vmatprep.mubr.f32.mxu1 %v1919_v3 }
 0x153   :  { %1795 = vmatmul.mubr.msk.f32.gmra.mrb[54].mxu0 %vm629_vm1, %v578_v56 }
 0x154   :  { %1813 = vmatmul.mubr.msk.f32.gmra.mrb[54].mxu1 %vm629_vm1, %v578_v56  ;;  %844 = vmatprep.mubr.f32.mxu0 %v1919_v3 }
 0x155   :  { %1017 = vmatprep.mubr.f32.mxu1 %v1919_v3 }
 0x157   :  { %1796 = vmatmul.mubr.msk.f32.gmra.mrb[56].mxu0 %vm629_vm1, %v579_v57 }
 0x158   :  { %850 = vmatprep.mubr.f32.mxu0 %v1919_v3  ;;  %1814 = vmatmul.mubr.msk.f32.gmra.mrb[56].mxu1 %vm629_vm1, %v579_v57 }
 0x159   :  { %1023 = vmatprep.mubr.f32.mxu1 %v1919_v3 }
 0x15b   :  { %1797 = vmatmul.mubr.msk.f32.gmra.mrb[58].mxu0 %vm629_vm1, %v580_v58 }
 0x15c   :  { %1815 = vmatmul.mubr.msk.f32.gmra.mrb[58].mxu1 %vm629_vm1, %v580_v58 }
 0x1ea   :  { %v750_v59 = vpop.f32.mrb[24].mxu0 }
 0x1eb   :  { %1118 = vrot.lane.b32.xlu0 %v750_v59, %s1921_s13  ;;  %v752_v60 = vpop.f32.mrb[25].mxu0  ;;  %v923_v61 = vpop.f32.mrb[24].mxu1 }
 0x1ec   :  { %v925_v62 = vpop.f32.mrb[25].mxu1 }
 0x1ee   :  { %v756_v63 = vpop.f32.mrb[26].mxu0 }
 0x1ef   :  { %1126 = vrot.lane.b32.xlu0 %v923_v61, %s1921_s13  ;;  %1120 = vrot.lane.b32.xlu1 %v756_v63, %s1921_s13  ;;  %v929_v0 = vpop.f32.mrb[26].mxu1  ;;  %v758_v1 = vpop.f32.mrb[27].mxu0 }
 0x1f0   :  { %v931_v2 = vpop.f32.mrb[27].mxu1 }
 0x1f2   :  { %v762_v4 = vpop.f32.mrb[28].mxu0 }
 0x1f3   :  { %1122 = vrot.lane.b32.xlu0 %v752_v60, %s1921_s13  ;;  %1128 = vrot.lane.b32.xlu1 %v929_v0, %s1921_s13  ;;  %v764_v3 = vpop.f32.mrb[29].mxu0  ;;  %v935_v5 = vpop.f32.mrb[28].mxu1 }
 0x1f4   :  { %v937_v6 = vpop.f32.mrb[29].mxu1 }
 0x1f6   :  { %v768_v7 = vpop.f32.mrb[30].mxu0 }
 0x1f7   :  { %1130 = vrot.lane.b32.xlu0 %v925_v62, %s1921_s13  ;;  %1124 = vrot.lane.b32.xlu1 %v758_v1, %s1921_s13  ;;  %v941_v8 = vpop.f32.mrb[30].mxu1  ;;  %v770_v9 = vpop.f32.mrb[31].mxu0 }
 0x1f8   :  { %v943_v10 = vpop.f32.mrb[31].mxu1 }
 0x1fa   :  { %v774_v11 = vpop.f32.mrb[32].mxu0 }
 0x1fb   :  { %1132 = vrot.lane.b32.xlu1 %v931_v2, %s1921_s13  ;;  %1191 = vrot.lane.b32.xlu0 %v762_v4, %s1922_s3  ;;  %v776_v12 = vpop.f32.mrb[33].mxu0  ;;  %v947_v13 = vpop.f32.mrb[32].mxu1  ;;  %v1707_v4 = vld [vmem:[%s2761_s0] sm:$0xff] }
 0x1fc   :  { %v949_v14 = vpop.f32.mrb[33].mxu1  ;;  %1715 = vst [vmem:[%s2765_s6 + $0x20] sm:$0xff] %v1707_v4 }
 0x1fe   :  { %v780_v15 = vpop.f32.mrb[34].mxu0 }
 0x1ff   :  { %1199 = vrot.lane.b32.xlu0 %v935_v5, %s1922_s3  ;;  %1193 = vrot.lane.b32.xlu1 %v768_v7, %s1922_s3  ;;  %v953_v16 = vpop.f32.mrb[34].mxu1  ;;  %v782_v17 = vpop.f32.mrb[35].mxu0  ;;  %v1709_v5 = vld [vmem:[%s2761_s0 + $0x10] sm:$0xff]  ;;  %v1711_v7 = vld [vmem:[%s2761_s0 + $0x20] sm:$0xff] }
 0x200   :  { %v955_v18 = vpop.f32.mrb[35].mxu1  ;;  %1717 = vst [vmem:[%s2765_s6 + $0x30] sm:$0xff] %v1709_v5  ;;  %1719 = vst [vmem:[%s2765_s6 + $0x40] sm:$0xff] %v1711_v7  ;;  %v1107_v7 = vld [vmem:[%s2767_s4 + $0x28] sm:$0xff] }
 0x202   :  { %v786_v19 = vpop.f32.mrb[36].mxu0 }
 0x203   :  { %1195 = vrot.lane.b32.xlu0 %v764_v3, %s1922_s3  ;;  %1201 = vrot.lane.b32.xlu1 %v941_v8, %s1922_s3  ;;  %v788_v20 = vpop.f32.mrb[37].mxu0  ;;  %v959_v21 = vpop.f32.mrb[36].mxu1  ;;  %v1708_v3 = vld [vmem:[%s2761_s0 + $0x8] sm:$0xff] }
 0x204   :  { %v961_v22 = vpop.f32.mrb[37].mxu1  ;;  %1716 = vst [vmem:[%s2765_s6 + $0x28] sm:$0xff] %v1708_v3  ;;  %v1712_v8 = vld [vmem:[%s2761_s0 + $0x28] sm:$0xff] }
 0x205   :  { %1720 = vst [vmem:[%s2765_s6 + $0x48] sm:$0xff] %v1712_v8  ;;  %v1108_v8 = vld [vmem:[%s2767_s4 + $0x30] sm:$0xff] }
 0x206   :  { %v792_v23 = vpop.f32.mrb[38].mxu0 }
 0x207   :  { %1203 = vrot.lane.b32.xlu0 %v937_v6, %s1922_s3  ;;  %1197 = vrot.lane.b32.xlu1 %v770_v9, %s1922_s3  ;;  %v965_v24 = vpop.f32.mrb[38].mxu1  ;;  %v794_v25 = vpop.f32.mrb[39].mxu0  ;;  %v1710_v6 = vld [vmem:[%s2761_s0 + $0x18] sm:$0xff]  ;;  %v1713_v9 = vld [vmem:[%s2761_s0 + $0x30] sm:$0xff] }
 0x208   :  { %v967_v26 = vpop.f32.mrb[39].mxu1  ;;  %1718 = vst [vmem:[%s2765_s6 + $0x38] sm:$0xff] %v1710_v6  ;;  %1721 = vst [vmem:[%s2765_s6 + $0x50] sm:$0xff] %v1713_v9  ;;  %v1105_v6 = vld [vmem:[%s2767_s4 + $0x18] sm:$0xff] }
 0x20a   :  { %v2258_v27 = vpop.f32.mrb[40].mxu0 }
 0x20b   :  { %1205 = vrot.lane.b32.xlu1 %v943_v10, %s1922_s3  ;;  %1263 = vrot.lane.b32.xlu0 %v774_v11, %s1923_s14  ;;  %v2260_v28 = vpop.f32.mrb[41].mxu0  ;;  %v2262_v29 = vpop.f32.mrb[40].mxu1  ;;  %v1714_v10 = vld [vmem:[%s2761_s0 + $0x38] sm:$0xff]  ;;  %v1827_v11 = vld [vmem:[%s2761_s0 + $0x40] sm:$0xff] }
 0x20c   :  { %v2264_v30 = vpop.f32.mrb[41].mxu1  ;;  %1722 = vst [vmem:[%s2765_s6 + $0x58] sm:$0xff] %v1714_v10  ;;  %1835 = vst [vmem:[%s2765_s6 + $0x80] sm:$0xff] %v1827_v11 }
 0x20e   :  { %v2266_v31 = vpop.f32.mrb[42].mxu0 }
 0x20f   :  { %1271 = vrot.lane.b32.xlu0 %v947_v13, %s1923_s14  ;;  %1265 = vrot.lane.b32.xlu1 %v780_v15, %s1923_s14  ;;  %v2268_v32 = vpop.f32.mrb[43].mxu0  ;;  %v2270_v33 = vpop.f32.mrb[42].mxu1  ;;  %v1829_v13 = vld [vmem:[%s2761_s0 + $0x50] sm:$0xff]  ;;  %v1831_v15 = vld [vmem:[%s2761_s0 + $0x60] sm:$0xff] }
 0x210   :  { %v2272_v34 = vpop.f32.mrb[43].mxu1  ;;  %1837 = vst [vmem:[%s2765_s6 + $0x90] sm:$0xff] %v1829_v13  ;;  %1839 = vst [vmem:[%s2765_s6 + $0xa0] sm:$0xff] %v1831_v15 }
 0x212   :  { %v810_v35 = vpop.f32.mrb[44].mxu0 }
 0x213   :  { %1267 = vrot.lane.b32.xlu0 %v776_v12, %s1923_s14  ;;  %1273 = vrot.lane.b32.xlu1 %v953_v16, %s1923_s14  ;;  %v812_v36 = vpop.f32.mrb[45].mxu0  ;;  %v983_v37 = vpop.f32.mrb[44].mxu1  ;;  %v1828_v12 = vld [vmem:[%s2761_s0 + $0x48] sm:$0xff] }
 0x214   :  { %v985_v38 = vpop.f32.mrb[45].mxu1  ;;  %1836 = vst [vmem:[%s2765_s6 + $0x88] sm:$0xff] %v1828_v12  ;;  %v1832_v16 = vld [vmem:[%s2761_s0 + $0x68] sm:$0xff] }
 0x215   :  { %1840 = vst [vmem:[%s2765_s6 + $0xa8] sm:$0xff] %v1832_v16 }
 0x216   :  { %v816_v39 = vpop.f32.mrb[46].mxu0 }
 0x217   :  { %1275 = vrot.lane.b32.xlu0 %v949_v14, %s1923_s14  ;;  %1269 = vrot.lane.b32.xlu1 %v782_v17, %s1923_s14  ;;  %v989_v40 = vpop.f32.mrb[46].mxu1  ;;  %v818_v41 = vpop.f32.mrb[47].mxu0  ;;  %v1830_v14 = vld [vmem:[%s2761_s0 + $0x58] sm:$0xff]  ;;  %v1833_v17 = vld [vmem:[%s2761_s0 + $0x70] sm:$0xff] }
 0x218   :  { %v991_v42 = vpop.f32.mrb[47].mxu1  ;;  %1838 = vst [vmem:[%s2765_s6 + $0x98] sm:$0xff] %v1830_v14  ;;  %1841 = vst [vmem:[%s2765_s6 + $0xb0] sm:$0xff] %v1833_v17 }
 0x21a   :  { %v822_v43 = vpop.f32.mrb[48].mxu0 }
 0x21b   :  { %1277 = vrot.lane.b32.xlu1 %v955_v18, %s1923_s14  ;;  %1335 = vrot.lane.b32.xlu0 %v786_v19, %s1924_s15  ;;  %v824_v44 = vpop.f32.mrb[49].mxu0  ;;  %v995_v45 = vpop.f32.mrb[48].mxu1  ;;  %v1834_v18 = vld [vmem:[%s2761_s0 + $0x78] sm:$0xff] }
 0x21c   :  { %v997_v46 = vpop.f32.mrb[49].mxu1  ;;  %1842 = vst [vmem:[%s2765_s6 + $0xb8] sm:$0xff] %v1834_v18 }
 0x21e   :  { %v828_v47 = vpop.f32.mrb[50].mxu0 }
 0x21f   :  { %1343 = vrot.lane.b32.xlu0 %v959_v21, %s1924_s15  ;;  %1337 = vrot.lane.b32.xlu1 %v792_v23, %s1924_s15  ;;  %v1001_v48 = vpop.f32.mrb[50].mxu1  ;;  %v830_v49 = vpop.f32.mrb[51].mxu0 }
 0x220   :  { %v1003_v50 = vpop.f32.mrb[51].mxu1 }
 0x222   :  { %v834_v51 = vpop.f32.mrb[52].mxu0 }
 0x223   :  { %1339 = vrot.lane.b32.xlu0 %v788_v20, %s1924_s15  ;;  %1345 = vrot.lane.b32.xlu1 %v965_v24, %s1924_s15  ;;  %v836_v52 = vpop.f32.mrb[53].mxu0  ;;  %v1007_v53 = vpop.f32.mrb[52].mxu1  ;;  %v1134_v20 = vlaneseq }
 0x224   :  { %v2274_v54 = vpop.f32.mrb[53].mxu1 }
 0x225   :  { %v2406_v21 = vand.u32 127, %v1134_v20 }
 0x226   :  { %v840_v55 = vpop.f32.mrb[54].mxu0 }
 0x227   :  { %1347 = vrot.lane.b32.xlu0 %v961_v22, %s1924_s15  ;;  %1341 = vrot.lane.b32.xlu1 %v794_v25, %s1924_s15  ;;  %v1013_v56 = vpop.f32.mrb[54].mxu1  ;;  %v2276_v57 = vpop.f32.mrb[55].mxu0  ;;  %vm1136_vm2 = vcmp.lt.s32.totalorder %v2406_v21, 17  ;;  %vm1207_vm3 = vcmp.lt.s32.totalorder %v2406_v21, 16  ;;  %vm1279_vm4 = vcmp.lt.s32.totalorder %v2406_v21, 15  ;;  %vm1351_vm5 = vcmp.lt.s32.totalorder %v2406_v21, 1 }
 0x228   :  { %v2278_v58 = vpop.f32.mrb[55].mxu1  ;;  %vm1439_vm6 = vcmp.lt.s32.totalorder %v2406_v21, 127  ;;  %vm1511_vm7 = vcmp.lt.s32.totalorder %v2406_v21, 113  ;;  %vm1583_vm8 = vcmp.lt.s32.totalorder %v2406_v21, 112  ;;  %vm1655_vm9 = vcmp.lt.s32.totalorder %v2406_v21, 111 }
 0x22a   :  { %v2280_v59 = vpop.f32.mrb[56].mxu0 }
 0x22b   :  { %1349 = vrot.lane.b32.xlu1 %v967_v26, %s1924_s15  ;;  %1423 = vrot.lane.b32.xlu0 %v810_v35, %s1925_s16  ;;  %v2282_v60 = vpop.f32.mrb[57].mxu0  ;;  %v2284_v61 = vpop.f32.mrb[56].mxu1 }
 0x22c   :  { %v2286_v62 = vpop.f32.mrb[57].mxu1 }
 0x22e   :  { %v2288_v63 = vpop.f32.mrb[58].mxu0 }
 0x22f   :  { %1431 = vrot.lane.b32.xlu0 %v983_v37, %s1925_s16  ;;  %1425 = vrot.lane.b32.xlu1 %v816_v39, %s1925_s16  ;;  %v2290_v0 = vpop.f32.mrb[58].mxu1  ;;  %v2292_v1 = vpop.f32.mrb[59].mxu0 }
 0x230   :  { %v2294_v2 = vpop.f32.mrb[59].mxu1 }
 0x233   :  { %1427 = vrot.lane.b32.xlu0 %v812_v36, %s1925_s16  ;;  %1433 = vrot.lane.b32.xlu1 %v989_v40, %s1925_s16  ;;  %v1148_v36 = vshrl.u32 %v1134_v20, 7 }
 0x237   :  { %1435 = vrot.lane.b32.xlu0 %v985_v38, %s1925_s16  ;;  %1429 = vrot.lane.b32.xlu1 %v818_v41, %s1925_s16 }
 0x23b   :  { %1437 = vrot.lane.b32.xlu1 %v991_v42, %s1925_s16  ;;  %1495 = vrot.lane.b32.xlu0 %v822_v43, %s1926_s17  ;;  %v2425_v43 = vsub.s32 1, %v1148_v36 }
 0x23f   :  { %1503 = vrot.lane.b32.xlu0 %v995_v45, %s1926_s17  ;;  %1497 = vrot.lane.b32.xlu1 %v828_v47, %s1926_s17  ;;  %v1145_v45 = vld [vmem:[%s2766_s5] ss:$8 sm:$0xf]  ;;  %v2435_v47 = vsub.s32 3, %v1148_v36 }
 0x243   :  { %1499 = vrot.lane.b32.xlu0 %v824_v44, %s1926_s17  ;;  %1505 = vrot.lane.b32.xlu1 %v1001_v48, %s1926_s17  ;;  %v2427_v44 = vsub.s32 2, %v1148_v36 }
 0x247   :  { %1507 = vrot.lane.b32.xlu0 %v997_v46, %s1926_s17  ;;  %1501 = vrot.lane.b32.xlu1 %v830_v49, %s1926_s17  ;;  %v2433_v46 = vsub.s32 0, %v1148_v36 }
 0x24b   :  { %1509 = vrot.lane.b32.xlu1 %v1003_v50, %s1926_s17  ;;  %1567 = vrot.lane.b32.xlu0 %v834_v51, %s1927_s18 }
 0x24f   :  { %1575 = vrot.lane.b32.xlu0 %v1007_v53, %s1927_s18  ;;  %1569 = vrot.lane.b32.xlu1 %v840_v55, %s1927_s18  ;;  %v1158_v53 = vrot.slane %v1145_v45, %v2427_v44  ;;  %v1162_v55 = vrot.slane %v1145_v45, %v2435_v47 }
 0x253   :  { %1571 = vrot.lane.b32.xlu0 %v836_v52, %s1927_s18  ;;  %1577 = vrot.lane.b32.xlu1 %v1013_v56, %s1927_s18  ;;  %v1154_v52 = vrot.slane %v1145_v45, %v2425_v43  ;;  %v1816_v56 = vld [vmem:[%s2766_s5 + $0x1] ss:$8 sm:$0xf] }
 0x254   :  { %v1222_v13 = vrot.slane %v1816_v56, %v2433_v46  ;;  %v1234_v14 = vrot.slane %v1816_v56, %v2435_v47 }
 0x257   :  { %1579 = vrot.lane.b32.xlu0 %v2274_v54, %s1927_s18  ;;  %1573 = vrot.lane.b32.xlu1 %v2276_v57, %s1927_s18  ;;  %v1150_v54 = vrot.slane %v1145_v45, %v2433_v46 }
 0x25b   :  { %1581 = vrot.lane.b32.xlu1 %v2278_v58, %s1927_s18  ;;  %1639 = vrot.lane.b32.xlu0 %v2280_v59, %s1928_s28 }
 0x25d   :  { %v1119_v19 = vpop.permute.xlu0 %1118 }
 0x25f   :  { %1647 = vrot.lane.b32.xlu0 %v2284_v61, %s1928_s28  ;;  %1641 = vrot.lane.b32.xlu1 %v2288_v63, %s1928_s28  ;;  %v1226_v61 = vrot.slane %v1816_v56, %v2425_v43  ;;  %v1103_v63 = vld [vmem:[%s2767_s4 + $0x8] sm:$0xff] }
 0x261   :  { %v1127_v22 = vpop.permute.xlu0 %1126  ;;  %v1121_v23 = vpop.permute.xlu1 %1120 }
 0x263   :  { %1643 = vrot.lane.b32.xlu0 %v2282_v60, %s1928_s28  ;;  %1649 = vrot.lane.b32.xlu1 %v2290_v0, %s1928_s28  ;;  %v1104_v0 = vld [vmem:[%s2767_s4 + $0x10] sm:$0xff] }
 0x265   :  { %v1123_v24 = vpop.permute.xlu0 %1122  ;;  %v1129_v25 = vpop.permute.xlu1 %1128 }
 0x266   :  { %v1139_v26 = vsel %vm1136_vm2, %v1123_v24, %v1127_v22  ;;  %v1141_v35 = vsel %vm1136_vm2, %v1119_v19, %v1123_v24 }
 0x267   :  { %1651 = vrot.lane.b32.xlu0 %v2286_v62, %s1928_s28  ;;  %1645 = vrot.lane.b32.xlu1 %v2292_v1, %s1928_s28  ;;  %v1168_v59 = vmul.f32 %v1154_v52, %v1141_v35  ;;  %v1169_v60 = vmul.f32 %v1158_v53, %v1139_v26  ;;  %v1230_v62 = vrot.slane %v1816_v56, %v2427_v44  ;;  %v1102_v1 = vld [vmem:[%s2767_s4] sm:$0xff] }
 0x269   :  { %v1131_v37 = vpop.permute.xlu0 %1130  ;;  %v1125_v38 = vpop.permute.xlu1 %1124  ;;  %v1176_v15 = vadd.f32 %v1168_v59, %v1103_v63  ;;  %v1177_v16 = vadd.f32 %v1169_v60, %v1104_v0 }
 0x26a   :  { %v1137_v39 = vsel %vm1136_vm2, %v1127_v22, %v1131_v37  ;;  %v1143_v40 = vsel %vm1136_vm2, %v1131_v37, %v1119_v19  ;;  %v1140_v41 = vsel %vm1136_vm2, %v1125_v38, %v1129_v25  ;;  %v1142_v42 = vsel %vm1136_vm2, %v1121_v23, %v1125_v38 }
 0x26b   :  { %1653 = vrot.lane.b32.xlu1 %v2294_v2, %s1928_s28  ;;  %v1167_v2 = vmul.f32 %v1150_v54, %v1143_v40  ;;  %v1170_v4 = vmul.f32 %v1162_v55, %v1137_v39  ;;  %v1172_v3 = vmul.f32 %v1154_v52, %v1142_v42  ;;  %v1173_v5 = vmul.f32 %v1158_v53, %v1140_v41  ;;  %v1109_v52 = vld [vmem:[%s2767_s4 + $0x38] sm:$0xff] }
 0x26d   :  { %v1133_v48 = vpop.permute.xlu1 %1132  ;;  %v1192_v49 = vpop.permute.xlu0 %1191  ;;  %v1175_v19 = vadd.f32 %v1167_v2, %v1102_v1  ;;  %v1178_v20 = vadd.f32 %v1170_v4, %v1105_v6  ;;  %v1180_v22 = vadd.f32 %v1172_v3, %v1107_v7  ;;  %v1817_v1 = vld [vmem:[%s2766_s5 + $0x2] ss:$8 sm:$0xf] }
 0x26e   :  { %v1138_v50 = vsel %vm1136_vm2, %v1129_v25, %v1133_v48  ;;  %v1144_v51 = vsel %vm1136_vm2, %v1133_v48, %v1121_v23  ;;  %v1181_v23 = vadd.f32 %v1173_v5, %v1108_v8  ;;  %v1298_v6 = vrot.slane %v1817_v1, %v2425_v43 }
 0x26f   :  { %v1171_v24 = vmul.f32 %v1150_v54, %v1144_v51  ;;  %v1174_v25 = vmul.f32 %v1162_v55, %v1138_v50  ;;  %v1106_v51 = vld [vmem:[%s2767_s4 + $0x20] sm:$0xff]  ;;  %v1302_v7 = vrot.slane %v1817_v1, %v2427_v44 }
 0x271   :  { %v1200_v57 = vpop.permute.xlu0 %1199  ;;  %v1194_v58 = vpop.permute.xlu1 %1193 }
 0x275   :  { %v1196_v9 = vpop.permute.xlu0 %1195  ;;  %v1202_v10 = vpop.permute.xlu1 %1201 }
 0x276   :  { %v1210_v11 = vsel %vm1207_vm3, %v1196_v9, %v1200_v57  ;;  %v1212_v12 = vsel %vm1207_vm3, %v1192_v49, %v1196_v9 }
 0x277   :  { %v1240_v17 = vmul.f32 %v1226_v61, %v1212_v12  ;;  %v1241_v18 = vmul.f32 %v1230_v62, %v1210_v11 }
 0x279   :  { %v1248_v26 = vadd.f32 %v1240_v17, %v1176_v15  ;;  %v1249_v35 = vadd.f32 %v1241_v18, %v1177_v16  ;;  %v1204_v36 = vpop.permute.xlu0 %1203  ;;  %v1198_v37 = vpop.permute.xlu1 %1197 }
 0x27a   :  { %v1208_v38 = vsel %vm1207_vm3, %v1200_v57, %v1204_v36  ;;  %v1214_v39 = vsel %vm1207_vm3, %v1204_v36, %v1192_v49  ;;  %v1211_v40 = vsel %vm1207_vm3, %v1198_v37, %v1202_v10  ;;  %v1213_v41 = vsel %vm1207_vm3, %v1194_v58, %v1198_v37 }
 0x27b   :  { %v1239_v42 = vmul.f32 %v1222_v13, %v1214_v39  ;;  %v1242_v45 = vmul.f32 %v1234_v14, %v1208_v38  ;;  %v1244_v48 = vmul.f32 %v1226_v61, %v1213_v41  ;;  %v1245_v50 = vmul.f32 %v1230_v62, %v1211_v40 }
 0x27c   :  { %v1179_v61 = vadd.f32 %v1171_v24, %v1106_v51  ;;  %v1182_v62 = vadd.f32 %v1174_v25, %v1109_v52  ;;  %v1818_v51 = vld [vmem:[%s2766_s5 + $0x3] ss:$8 sm:$0xf] }
 0x27d   :  { %v1247_v53 = vadd.f32 %v1239_v42, %v1175_v19  ;;  %v1250_v49 = vadd.f32 %v1242_v45, %v1178_v20  ;;  %v1252_v54 = vadd.f32 %v1244_v48, %v1180_v22  ;;  %v1253_v55 = vadd.f32 %v1245_v50, %v1181_v23  ;;  %v1206_v56 = vpop.permute.xlu1 %1205  ;;  %v1264_v57 = vpop.permute.xlu0 %1263 }
 0x27e   :  { %v1209_v59 = vsel %vm1207_vm3, %v1202_v10, %v1206_v56  ;;  %v1215_v60 = vsel %vm1207_vm3, %v1206_v56, %v1194_v58 }
 0x27f   :  { %v1243_v63 = vmul.f32 %v1222_v13, %v1215_v60  ;;  %v1246_v0 = vmul.f32 %v1234_v14, %v1209_v59  ;;  %v1294_v13 = vrot.slane %v1817_v1, %v2433_v46  ;;  %v1306_v14 = vrot.slane %v1817_v1, %v2435_v47 }
 0x280   :  { %v1378_v1 = vrot.slane %v1818_v51, %v2435_v47 }
 0x281   :  { %v1251_v2 = vadd.f32 %v1243_v63, %v1179_v61  ;;  %v1254_v4 = vadd.f32 %v1246_v0, %v1182_v62  ;;  %v1272_v3 = vpop.permute.xlu0 %1271  ;;  %v1266_v5 = vpop.permute.xlu1 %1265  ;;  %v1366_v0 = vrot.slane %v1818_v51, %v2433_v46 }
 0x285   :  { %v1268_v8 = vpop.permute.xlu0 %1267  ;;  %v1274_v58 = vpop.permute.xlu1 %1273 }
 0x286   :  { %v1282_v9 = vsel %vm1279_vm4, %v1268_v8, %v1272_v3  ;;  %v1284_v10 = vsel %vm1279_vm4, %v1264_v57, %v1268_v8 }
 0x287   :  { %v1312_v11 = vmul.f32 %v1298_v6, %v1284_v10  ;;  %v1313_v12 = vmul.f32 %v1302_v7, %v1282_v9 }
 0x289   :  { %v1320_v15 = vadd.f32 %v1312_v11, %v1248_v26  ;;  %v1321_v16 = vadd.f32 %v1313_v12, %v1249_v35  ;;  %v1276_v17 = vpop.permute.xlu0 %1275  ;;  %v1270_v18 = vpop.permute.xlu1 %1269 }
 0x28a   :  { %v1280_v19 = vsel %vm1279_vm4, %v1272_v3, %v1276_v17  ;;  %v1286_v20 = vsel %vm1279_vm4, %v1276_v17, %v1264_v57  ;;  %v1283_v22 = vsel %vm1279_vm4, %v1270_v18, %v1274_v58  ;;  %v1285_v23 = vsel %vm1279_vm4, %v1266_v5, %v1270_v18 }
 0x28b   :  { %v1311_v24 = vmul.f32 %v1294_v13, %v1286_v20  ;;  %v1314_v25 = vmul.f32 %v1306_v14, %v1280_v19  ;;  %v1316_v36 = vmul.f32 %v1298_v6, %v1285_v23  ;;  %v1317_v37 = vmul.f32 %v1302_v7, %v1283_v22 }
 0x28d   :  { %v1319_v26 = vadd.f32 %v1311_v24, %v1247_v53  ;;  %v1322_v35 = vadd.f32 %v1314_v25, %v1250_v49  ;;  %v1324_v38 = vadd.f32 %v1316_v36, %v1252_v54  ;;  %v1325_v39 = vadd.f32 %v1317_v37, %v1253_v55  ;;  %v1278_v40 = vpop.permute.xlu1 %1277  ;;  %v1336_v41 = vpop.permute.xlu0 %1335 }
 0x28e   :  { %v1281_v42 = vsel %vm1279_vm4, %v1274_v58, %v1278_v40  ;;  %v1287_v45 = vsel %vm1279_vm4, %v1278_v40, %v1266_v5  ;;  %v1370_v54 = vrot.slane %v1818_v51, %v2425_v43  ;;  %v1374_v55 = vrot.slane %v1818_v51, %v2427_v44 }
 0x28f   :  { %v1315_v48 = vmul.f32 %v1294_v13, %v1287_v45  ;;  %v1318_v50 = vmul.f32 %v1306_v14, %v1281_v42 }
 0x291   :  { %v1323_v52 = vadd.f32 %v1315_v48, %v1251_v2  ;;  %v1326_v56 = vadd.f32 %v1318_v50, %v1254_v4  ;;  %v1344_v53 = vpop.permute.xlu0 %1343  ;;  %v1338_v49 = vpop.permute.xlu1 %1337 }
 0x295   :  { %v1340_v57 = vpop.permute.xlu0 %1339  ;;  %v1346_v59 = vpop.permute.xlu1 %1345 }
 0x296   :  { %v1354_v60 = vsel %vm1351_vm5, %v1340_v57, %v1344_v53  ;;  %v1356_v61 = vsel %vm1351_vm5, %v1336_v41, %v1340_v57 }
 0x297   :  { %v1384_v62 = vmul.f32 %v1370_v54, %v1356_v61  ;;  %v1385_v63 = vmul.f32 %v1374_v55, %v1354_v60 }
 0x299   :  { %v1392_v2 = vadd.f32 %v1384_v62, %v1320_v15  ;;  %v1393_v4 = vadd.f32 %v1385_v63, %v1321_v16  ;;  %v1348_v3 = vpop.permute.xlu0 %1347  ;;  %v1342_v5 = vpop.permute.xlu1 %1341  ;;  %v1821_v63 = vld [vmem:[%s2766_s5 + $0x7] ss:$8 sm:$0xf] }
 0x29a   :  { %v1352_v6 = vsel %vm1351_vm5, %v1344_v53, %v1348_v3  ;;  %v1358_v7 = vsel %vm1351_vm5, %v1348_v3, %v1336_v41  ;;  %v1355_v8 = vsel %vm1351_vm5, %v1342_v5, %v1346_v59  ;;  %v1357_v58 = vsel %vm1351_vm5, %v1338_v49, %v1342_v5 }
 0x29b   :  { %v1383_v9 = vmul.f32 %v1366_v0, %v1358_v7  ;;  %v1386_v10 = vmul.f32 %v1378_v1, %v1352_v6  ;;  %v1388_v11 = vmul.f32 %v1370_v54, %v1357_v58  ;;  %v1389_v12 = vmul.f32 %v1374_v55, %v1355_v8  ;;  %v1820_v54 = vld [vmem:[%s2766_s5 + $0x6] ss:$8 sm:$0xf] }
 0x29c   :  { %v2538_v13 = vadd.f32 %v1392_v2, %v2260_v28  ;;  %v2541_v14 = vadd.f32 %v1393_v4, %v2262_v29  ;;  %v2595_v2 = vrot.slane %v1820_v54, %v2427_v44  ;;  %v2602_v5 = vrot.slane %v1820_v54, %v2435_v47 }
 0x29d   :  { %v1391_v15 = vadd.f32 %v1383_v9, %v1319_v26  ;;  %v1394_v16 = vadd.f32 %v1386_v10, %v1322_v35  ;;  %v1396_v17 = vadd.f32 %v1388_v11, %v1324_v38  ;;  %v1397_v18 = vadd.f32 %v1389_v12, %v1325_v39  ;;  %v1350_v19 = vpop.permute.xlu1 %1349  ;;  %v1424_v20 = vpop.permute.xlu0 %1423  ;;  %v1822_v11 = vld [vmem:[%s2766_s5 + $0x20] ss:$8 sm:$0xf] }
 0x29e   :  { %v1353_v22 = vsel %vm1351_vm5, %v1346_v59, %v1350_v19  ;;  %v1359_v23 = vsel %vm1351_vm5, %v1350_v19, %v1338_v49  ;;  %v2612_v9 = vrot.slane %v1821_v63, %v2433_v46  ;;  %v2615_v10 = vrot.slane %v1821_v63, %v2425_v43 }
 0x29f   :  { %v1387_v24 = vmul.f32 %v1366_v0, %v1359_v23  ;;  %v1390_v25 = vmul.f32 %v1378_v1, %v1353_v22  ;;  %v2548_v28 = vadd.f32 %v1391_v15, %v2258_v27  ;;  %v2551_v29 = vadd.f32 %v1394_v16, %v2264_v30 }
 0x2a0   :  { %v2554_v36 = vadd.f32 %v1396_v17, %v2268_v32  ;;  %v2557_v37 = vadd.f32 %v1397_v18, %v2270_v33  ;;  %v1526_v0 = vrot.slane %v1820_v54, %v2433_v46  ;;  %v1530_v1 = vrot.slane %v1820_v54, %v2425_v43 }
 0x2a1   :  { %v1395_v26 = vadd.f32 %v1387_v24, %v1323_v52  ;;  %v1398_v35 = vadd.f32 %v1390_v25, %v1326_v56  ;;  %v1432_v38 = vpop.permute.xlu0 %1431  ;;  %v1426_v39 = vpop.permute.xlu1 %1425  ;;  %v2625_v16 = vrot.slane %v1821_v63, %v2427_v44  ;;  %v2628_v17 = vrot.slane %v1821_v63, %v2435_v47 }
 0x2a3   :  { %v2560_v40 = vadd.f32 %v1395_v26, %v2266_v31  ;;  %v2563_v41 = vadd.f32 %v1398_v35, %v2272_v34  ;;  %v1819_v34 = vld [vmem:[%s2766_s5 + $0x5] ss:$8 sm:$0xf]  ;;  %v2635_v35 = vrot.slane %v1822_v11, %v2433_v46 }
 0x2a4   :  { %v1454_v59 = vrot.slane %v1819_v34, %v2433_v46  ;;  %v1458_v60 = vrot.slane %v1819_v34, %v2425_v43  ;;  %v1462_v61 = vrot.slane %v1819_v34, %v2427_v44  ;;  %v1466_v62 = vrot.slane %v1819_v34, %v2435_v47 }
 0x2a5   :  { %v1428_v27 = vpop.permute.xlu0 %1427  ;;  %v1434_v42 = vpop.permute.xlu1 %1433 }
 0x2a6   :  { %v1442_v4 = vsel %vm1439_vm6, %v1428_v27, %v1432_v38  ;;  %v1444_v3 = vsel %vm1439_vm6, %v1424_v20, %v1428_v27 }
 0x2a7   :  { %v1471_v18 = vmul.f32 %v1454_v59, %v1444_v3  ;;  %v1472_v19 = vmul.f32 %v1458_v60, %v1442_v4 }
 0x2a9   :  { %v1436_v30 = vpop.permute.xlu0 %1435  ;;  %v1430_v45 = vpop.permute.xlu1 %1429  ;;  %v1480_v54 = vadd.f32 %v1472_v19, %v2538_v13 }
 0x2aa   :  { %v1440_v8 = vsel %vm1439_vm6, %v1432_v38, %v1436_v30  ;;  %v1446_v58 = vsel %vm1439_vm6, %v1436_v30, %v1424_v20  ;;  %v1443_v12 = vsel %vm1439_vm6, %v1430_v45, %v1434_v42  ;;  %v1445_v15 = vsel %vm1439_vm6, %v1426_v39, %v1430_v45 }
 0x2ab   :  { %v1473_v23 = vmul.f32 %v1462_v61, %v1440_v8  ;;  %v1474_v24 = vmul.f32 %v1466_v62, %v1446_v58  ;;  %v2638_v38 = vrot.slane %v1822_v11, %v2425_v43  ;;  %v1475_v27 = vmul.f32 %v1454_v59, %v1445_v15 }
 0x2ac   :  { %v1476_v30 = vmul.f32 %v1458_v60, %v1443_v12  ;;  %v2641_v45 = vrot.slane %v1822_v11, %v2427_v44  ;;  %v1479_v43 = vadd.f32 %v1471_v18, %v2548_v28 }
 0x2ad   :  { %v1438_v48 = vpop.permute.xlu1 %1437  ;;  %v1496_v32 = vpop.permute.xlu0 %1495  ;;  %v1481_v59 = vadd.f32 %v1473_v23, %v2541_v14  ;;  %v1482_v60 = vadd.f32 %v1474_v24, %v2551_v29 }
 0x2ae   :  { %v1441_v20 = vsel %vm1439_vm6, %v1434_v42, %v1438_v48  ;;  %v1447_v22 = vsel %vm1439_vm6, %v1438_v48, %v1426_v39  ;;  %v2644_v42 = vrot.slane %v1822_v11, %v2435_v47 }
 0x2af   :  { %v1477_v34 = vmul.f32 %v1462_v61, %v1441_v20  ;;  %v1478_v39 = vmul.f32 %v1466_v62, %v1447_v22  ;;  %v1483_v62 = vadd.f32 %v1475_v27, %v2560_v40 }
 0x2b1   :  { %v1504_v50 = vpop.permute.xlu0 %1503  ;;  %v2565_v51 = vpop.permute.xlu1 %1497  ;;  %v1485_v14 = vadd.f32 %v1477_v34, %v2557_v37  ;;  %v1486_v29 = vadd.f32 %v1478_v39, %v2563_v41 }
 0x2b5   :  { %v1500_v33 = vpop.permute.xlu0 %1499  ;;  %v2567_v52 = vpop.permute.xlu1 %1505 }
 0x2b6   :  { %v1514_v48 = vsel %vm1511_vm7, %v1500_v33, %v1504_v50  ;;  %v1516_v46 = vsel %vm1511_vm7, %v1496_v32, %v1500_v33 }
 0x2b7   :  { %v1543_v63 = vmul.f32 %v1526_v0, %v1516_v46 }
 0x2b9   :  { %v1508_v56 = vpop.permute.xlu0 %1507  ;;  %v1502_v53 = vpop.permute.xlu1 %1501  ;;  %v1551_v11 = vadd.f32 %v1543_v63, %v1479_v43 }
 0x2ba   :  { %v1512_v44 = vsel %vm1511_vm7, %v1504_v50, %v1508_v56  ;;  %v1518_v47 = vsel %vm1511_vm7, %v1508_v56, %v1496_v32  ;;  %v1515_v33 = vsel %vm1511_vm7, %v1502_v53, %v2567_v52  ;;  %v1517_v28 = vsel %vm1511_vm7, %v2565_v51, %v1502_v53 }
 0x2bb   :  { %v1484_v50 = vadd.f32 %v1476_v30, %v2554_v36  ;;  %v1544_v32 = vmul.f32 %v1530_v1, %v1514_v48  ;;  %v1545_v56 = vmul.f32 %v2595_v2, %v1512_v44  ;;  %v1546_v4 = vmul.f32 %v2602_v5, %v1518_v47 }
 0x2bc   :  { %v1547_v3 = vmul.f32 %v1526_v0, %v1517_v28  ;;  %v1548_v8 = vmul.f32 %v1530_v1, %v1515_v33 }
 0x2bd   :  { %v2569_v49 = vpop.permute.xlu1 %1509  ;;  %v2571_v31 = vpop.permute.xlu0 %1567  ;;  %v1553_v12 = vadd.f32 %v1545_v56, %v1481_v59  ;;  %v1554_v15 = vadd.f32 %v1546_v4, %v1482_v60 }
 0x2c1   :  { %v2579_v55 = vpop.permute.xlu0 %1575  ;;  %v2581_v57 = vpop.permute.xlu1 %1569 }
 0x2c5   :  { %v1572_v6 = vpop.permute.xlu0 %1571  ;;  %v2605_v7 = vpop.permute.xlu1 %1577 }
 0x2c6   :  { %v1586_v53 = vsel %vm1583_vm8, %v1572_v6, %v2579_v55  ;;  %v1588_v36 = vsel %vm1583_vm8, %v2571_v31, %v1572_v6  ;;  %v1552_v6 = vadd.f32 %v1544_v32, %v1480_v54 }
 0x2c7   :  { %v1615_v18 = vmul.f32 %v2612_v9, %v1588_v36  ;;  %v1616_v19 = vmul.f32 %v2615_v10, %v1586_v53 }
 0x2c9   :  { %v1580_v25 = vpop.permute.xlu0 %1579  ;;  %v1574_v26 = vpop.permute.xlu1 %1573  ;;  %v1623_v39 = vadd.f32 %v1615_v18, %v1551_v11 }
 0x2ca   :  { %v1584_v37 = vsel %vm1583_vm8, %v2579_v55, %v1580_v25  ;;  %v1590_v40 = vsel %vm1583_vm8, %v1580_v25, %v2571_v31  ;;  %v1587_v41 = vsel %vm1583_vm8, %v1574_v26, %v2605_v7  ;;  %v1589_v0 = vsel %vm1583_vm8, %v2581_v57, %v1574_v26 }
 0x2cb   :  { %v1513_v55 = vsel %vm1511_vm7, %v2567_v52, %v2569_v49  ;;  %v1519_v31 = vsel %vm1511_vm7, %v2569_v49, %v2565_v51  ;;  %v1617_v20 = vmul.f32 %v2625_v16, %v1584_v37  ;;  %v1618_v22 = vmul.f32 %v2628_v17, %v1590_v40 }
 0x2cc   :  { %v1619_v23 = vmul.f32 %v2612_v9, %v1589_v0  ;;  %v1620_v24 = vmul.f32 %v2615_v10, %v1587_v41  ;;  %v1555_v52 = vadd.f32 %v1547_v3, %v1483_v62  ;;  %v1556_v25 = vadd.f32 %v1548_v8, %v1484_v50 }
 0x2cd   :  { %v1582_v61 = vpop.permute.xlu1 %1581  ;;  %v1640_v13 = vpop.permute.xlu0 %1639  ;;  %v1549_v26 = vmul.f32 %v2595_v2, %v1513_v55  ;;  %v1550_v51 = vmul.f32 %v2602_v5, %v1519_v31  ;;  %v1624_v2 = vadd.f32 %v1616_v19, %v1552_v6  ;;  %v1625_v46 = vadd.f32 %v1617_v20, %v1553_v12 }
 0x2ce   :  { %v1585_v30 = vsel %vm1583_vm8, %v2605_v7, %v1582_v61  ;;  %v1591_v34 = vsel %vm1583_vm8, %v1582_v61, %v2581_v57  ;;  %v1626_v43 = vadd.f32 %v1618_v22, %v1554_v15  ;;  %v1627_v54 = vadd.f32 %v1619_v23, %v1555_v52 }
 0x2cf   :  { %v1628_v7 = vadd.f32 %v1620_v24, %v1556_v25  ;;  %v1621_v44 = vmul.f32 %v2625_v16, %v1585_v30  ;;  %v1622_v57 = vmul.f32 %v2628_v17, %v1591_v34  ;;  %v1557_v32 = vadd.f32 %v1549_v26, %v1485_v14 }
 0x2d0   :  { %v1558_v56 = vadd.f32 %v1550_v51, %v1486_v29 }
 0x2d1   :  { %v1648_v1 = vpop.permute.xlu0 %1647  ;;  %v1642_v58 = vpop.permute.xlu1 %1641  ;;  %v1629_v41 = vadd.f32 %v1621_v44, %v1557_v32 }
 0x2d2   :  { %v1630_v0 = vadd.f32 %v1622_v57, %v1558_v56 }
 0x2d5   :  { %v1644_v49 = vpop.permute.xlu0 %1643  ;;  %v1650_v27 = vpop.permute.xlu1 %1649 }
 0x2d6   :  { %v1658_v9 = vsel %vm1655_vm9, %v1644_v49, %v1648_v1  ;;  %v1660_v10 = vsel %vm1655_vm9, %v1640_v13, %v1644_v49 }
 0x2d7   :  { %v1687_v5 = vmul.f32 %v2635_v35, %v1660_v10  ;;  %v1688_v48 = vmul.f32 %v2638_v38, %v1658_v9 }
 0x2d9   :  { %v1695_v47 = vadd.f32 %v1687_v5, %v1623_v39  ;;  %v1696_v59 = vadd.f32 %v1688_v48, %v1624_v2  ;;  %v1652_v60 = vpop.permute.xlu0 %1651  ;;  %v1646_v33 = vpop.permute.xlu1 %1645 }
 0x2da   :  { %v1656_v28 = vsel %vm1655_vm9, %v1648_v1, %v1652_v60  ;;  %v1662_v61 = vsel %vm1655_vm9, %v1652_v60, %v1640_v13  ;;  %v1659_v62 = vsel %vm1655_vm9, %v1646_v33, %v1650_v27  ;;  %v1661_v50 = vsel %vm1655_vm9, %v1642_v58, %v1646_v33 }
 0x2db   :  { %1703 = vst [vmem:[%s2765_s6] sm:$0xff] %v1695_v47  ;;  %1704 = vst [vmem:[%s2765_s6 + $0x8] sm:$0xff] %v1696_v59  ;;  %v1689_v16 = vmul.f32 %v2641_v45, %v1656_v28  ;;  %v1690_v17 = vmul.f32 %v2644_v42, %v1662_v61  ;;  %v1691_v13 = vmul.f32 %v2635_v35, %v1661_v50 }
 0x2dc   :  { %v1692_v63 = vmul.f32 %v2638_v38, %v1659_v62 }
 0x2dd   :  { %v1697_v4 = vadd.f32 %v1689_v16, %v1625_v46  ;;  %v1698_v3 = vadd.f32 %v1690_v17, %v1626_v43  ;;  %v1699_v8 = vadd.f32 %v1691_v13, %v1627_v54  ;;  %v1654_v36 = vpop.permute.xlu1 %1653 }
 0x2de   :  { %v1700_v53 = vadd.f32 %v1692_v63, %v1628_v7  ;;  %v1657_v37 = vsel %vm1655_vm9, %v1650_v27, %v1654_v36  ;;  %v1663_v40 = vsel %vm1655_vm9, %v1654_v36, %v1642_v58 }
 0x2df   :  { %1823 = vst [vmem:[%s2765_s6 + $0x60] sm:$0xff] %v1697_v4  ;;  %1824 = vst [vmem:[%s2765_s6 + $0x68] sm:$0xff] %v1698_v3  ;;  %v1693_v21 = vmul.f32 %v2641_v45, %v1657_v37  ;;  %v1694_v35 = vmul.f32 %v2644_v42, %v1663_v40 }
 0x2e0   :  { %1705 = vst [vmem:[%s2765_s6 + $0x10] sm:$0xff] %v1699_v8  ;;  %1706 = vst [vmem:[%s2765_s6 + $0x18] sm:$0xff] %v1700_v53 }
 0x2e1   :  { %v1701_v38 = vadd.f32 %v1693_v21, %v1629_v41  ;;  %v1702_v14 = vadd.f32 %v1694_v35, %v1630_v0 }
 0x2e3   :  { %1825 = vst [vmem:[%s2765_s6 + $0x70] sm:$0xff] %v1701_v38  ;;  %1826 = vst [vmem:[%s2765_s6 + $0x78] sm:$0xff] %v1702_v14 }

</bundles_post_ra>
